<compile_context>
chip_gen: v6e
topology: v6e:2x2x1
jax: 0.10.0
libtpu: 0.0.40
codegen_flags: <defaults>
</compile_context>

<pallas_src>
import functools

import jax
import jax.numpy as jnp
from jax import lax
from jax.experimental import pallas as pl
from jax.experimental.pallas import tpu as pltpu

EPS = 1e-5
_HIGHEST = jax.lax.Precision.HIGHEST


def convblock_kernel(x_ref, wb1_ref, g1_ref, be1_ref,
                     wb2_ref, g2_ref, be2_ref,
                     pool_ref, bcast_ref, o_ref, *, H, W):
    # x_ref:    (N*H, W*Cin)          input, channels-in-lanes (lane = x*C + c)
    # wb*_ref:  (3*W*Cin, W*Cout)     bf16 K-fused banded (block-tridiag) weights
    # g*/be*:   (1, Cout)             BN gamma / beta (per channel)
    # pool_ref: (W*Cout, Cout)        lane -> channel summation matrix
    # bcast_ref:(Cout, W*Cout)        channel -> lane broadcast matrix (pool.T)
    # o_ref:    (N*H, W*Cout)
    NH = x_ref.shape[0]
    inv_m = 1.0 / float(NH * W)            # 1 / (N*H*W) elements per channel

    pool = pool_ref[...]
    bcast = bcast_ref[...]

    # Row-validity masks for the ky = 0 / ky = 2 taps (image top / bottom).
    y = lax.broadcasted_iota(jnp.int32, (NH, 1), 0) % H
    not_top = y > 0                        # input row y-1 exists
    not_bot = y < (H - 1)                  # input row y+1 exists

    def conv3x3(inp_f32, wb_ref):
        # ky shifts: sublane rolls (XLU) + masks instead of padded slices,
        # then a single K=3*W*Cin MXU matmul against the K-stacked bands
        # (accumulation over ky/kx happens inside the MXU accumulator).
        up = jnp.where(not_top, pltpu.roll(inp_f32, shift=1, axis=0), 0.0)
        dn = jnp.where(not_bot, pltpu.roll(inp_f32, shift=NH - 1, axis=0), 0.0)
        operand = jnp.concatenate([up, inp_f32, dn], axis=1)   # (NH, 3*W*Cin)
        return jnp.dot(operand.astype(jnp.bfloat16), wb_ref[...],
                       preferred_element_type=jnp.float32)
        # Conv bias is omitted: it cancels exactly under batch-statistic BN.

    def batchnorm_train(acc, gamma, beta):
        # One-pass batch statistics (sum / sumsq), folded over the W lane
        # groups with one tiny high-precision matmul, broadcast back with a
        # second one, then applied as a single per-lane FMA.
        lane_s = jnp.sum(acc, axis=0, keepdims=True)            # (1, W*C)
        lane_q = jnp.sum(acc * acc, axis=0, keepdims=True)      # (1, W*C)
        ch_sq = jnp.dot(jnp.concatenate([lane_s, lane_q], axis=0), pool,
                        precision=_HIGHEST,
                        preferred_element_type=jnp.float32)     # (2, C)
        mean = ch_sq[0:1, :] * inv_m
        var = ch_sq[1:2, :] * inv_m - mean * mean
        scale = gamma * lax.rsqrt(var + EPS)                    # EUP rsqrt
        shift = beta - mean * scale
        ss_lane = jnp.dot(jnp.concatenate([scale, shift], axis=0), bcast,
                          precision=_HIGHEST,
                          preferred_element_type=jnp.float32)   # (2, W*C)
        return acc * ss_lane[0:1, :] + ss_lane[1:2, :]          # one FMA/elem

    # conv1 -> bn1 -> relu
    h1 = conv3x3(x_ref[...], wb1_ref)
    h1 = jnp.maximum(batchnorm_train(h1, g1_ref[...], be1_ref[...]), 0.0)

    # conv2 -> bn2
    h2 = conv3x3(h1, wb2_ref)
    h2 = batchnorm_train(h2, g2_ref[...], be2_ref[...])

    # residual add (conv3 is None in the module's default config) + final relu
    o_ref[...] = jnp.maximum(h2 + x_ref[...], 0.0).astype(o_ref.dtype)


def _banded_weights(w_hwio, W):
    """(3,3,Cin,Cout) HWIO -> (3*W*Cin, W*Cout) K-stacked block-tridiag bands.

    Band ky (K rows [ky*W*Cin, (ky+1)*W*Cin)):
      band[x_in*Cin + ci, x_out*Cout + co] = w[ky, x_in - x_out + 1, ci, co]
    (zero outside the tridiagonal), so one matmul applies all 9 taps including
    the left/right zero padding; ky padding is handled by row masks in-kernel.
    """
    Cin, Cout = int(w_hwio.shape[2]), int(w_hwio.shape[3])
    bands = []
    for ky in range(3):
        band = jnp.zeros((W * Cin, W * Cout), jnp.float32)
        for kx in range(3):
            # select x_out = x_in - (kx - 1)
            sel = jnp.eye(W, k=-(kx - 1), dtype=jnp.float32)
            band = band + jnp.kron(sel, w_hwio[ky, kx].astype(jnp.float32))
        bands.append(band)
    return jnp.concatenate(bands, axis=0)       # (3*W*Cin, W*Cout)


def conv_block_forward_rows(x_rows, wb1, g1, be1, wb2, g2, be2, pool, bcast,
                            *, H, W):
    """Lane-dense entry point: (N*H, W*Cin) rows in, (N*H, W*Cout) rows out.

    Stacked ConvBlocks should chain this directly and convert NCHW only once
    at the model boundary.
    """
    NH, WC_in = x_rows.shape
    WC = wb1.shape[1]
    Ch = g1.shape[-1]

    kernel = functools.partial(convblock_kernel, H=H, W=W)

    flops = 2 * NH * (3 * WC_in) * WC + 2 * NH * (3 * WC) * WC
    bytes_accessed = (4 * NH * (WC_in + WC)            # x in + out
                      + 2 * (wb1.size + wb2.size)      # bf16 banded weights
                      + 4 * (pool.size + bcast.size + 4 * Ch))

    grid_spec = pltpu.PrefetchScalarGridSpec(
        num_scalar_prefetch=0,
        grid=(1,),
        in_specs=[
            pl.BlockSpec((NH, WC_in), lambda i: (0, 0)),        # x rows
            pl.BlockSpec((3 * WC_in, WC), lambda i: (0, 0)),    # wb1
            pl.BlockSpec((1, Ch), lambda i: (0, 0)),            # gamma1
            pl.BlockSpec((1, Ch), lambda i: (0, 0)),            # beta1
            pl.BlockSpec((3 * WC, WC), lambda i: (0, 0)),       # wb2
            pl.BlockSpec((1, Ch), lambda i: (0, 0)),            # gamma2
            pl.BlockSpec((1, Ch), lambda i: (0, 0)),            # beta2
            pl.BlockSpec((WC, Ch), lambda i: (0, 0)),           # pool
            pl.BlockSpec((Ch, WC), lambda i: (0, 0)),           # bcast
        ],
        out_specs=pl.BlockSpec((NH, WC), lambda i: (0, 0)),
    )

    return pl.pallas_call(
        kernel,
        out_shape=jax.ShapeDtypeStruct((NH, WC), x_rows.dtype),
        grid_spec=grid_spec,
        compiler_params=pltpu.CompilerParams(
            dimension_semantics=("arbitrary",),
            vmem_limit_bytes=32 * 1024 * 1024),     # safe on v7x's 64 MiB too
        cost_estimate=pl.CostEstimate(
            flops=int(flops),
            transcendentals=int(2 * Ch),
            bytes_accessed=int(bytes_accessed)),
    )(x_rows, wb1, g1, be1, wb2, g2, be2, pool, bcast)


@jax.jit
def conv_block_forward(x_nchw, params):
    """ConvBlock forward, NCHW boundary wrapper. (N,C,H,W) f32 -> (N,C,H,W)."""
    N, C, H, W = x_nchw.shape
    Ch = params["w1"].shape[-1]

    # One-time boundary layout change: NCHW -> lane-dense (N*H, W*C) slab
    # (lane = x*C + c). Chained blocks should stay in rows layout instead.
    x_rows = jnp.transpose(x_nchw, (0, 2, 3, 1)).reshape(N * H, W * C)

    wb1 = _banded_weights(params["w1"], W).astype(jnp.bfloat16)
    wb2 = _banded_weights(params["w2"], W).astype(jnp.bfloat16)
    pool = jnp.tile(jnp.eye(Ch, dtype=jnp.float32), (W, 1))    # (W*Ch, Ch)
    bcast = pool.T                                             # (Ch, W*Ch)

    out_rows = conv_block_forward_rows(
        x_rows, wb1, params["g1"], params["be1"],
        wb2, params["g2"], params["be2"], pool, bcast, H=H, W=W)

    out = out_rows.reshape(N, H, W, Ch)
    return jnp.transpose(out, (0, 3, 1, 2))                    # -> NCHW


# ---------------- pure-JAX reference (for correctness check) ----------------
def _conv2d_nhwc(x, w_hwio, b):
    y = lax.conv_general_dilated(
        x, w_hwio, window_strides=(1, 1), padding="SAME",
        dimension_numbers=("NHWC", "HWIO", "NHWC"))
    return y + b.reshape(1, 1, 1, -1)


def _bn_train(x, gamma, beta):
    mean = jnp.mean(x, axis=(0, 1, 2), keepdims=True)
    var = jnp.mean((x - mean) ** 2, axis=(0, 1, 2), keepdims=True)
    return (x - mean) * lax.rsqrt(var + EPS) * gamma.reshape(1, 1, 1, -1) \
        + beta.reshape(1, 1, 1, -1)


def ref_forward(x_nchw, params):
    x = jnp.transpose(x_nchw, (0, 2, 3, 1))
    residual = x
    h = jax.nn.relu(_bn_train(_conv2d_nhwc(x, params["w1"], params["b1"]),
                              params["g1"], params["be1"]))
    h = _bn_train(_conv2d_nhwc(h, params["w2"], params["b2"]),
                  params["g2"], params["be2"])
    out = jax.nn.relu(h + residual)
    return jnp.transpose(out, (0, 3, 1, 2))


def init_params(key, in_feature, hidden):
    k1, k2, k3, k4 = jax.random.split(key, 4)
    fan1 = in_feature * 9
    fan2 = hidden * 9
    w1 = jax.random.uniform(k1, (3, 3, in_feature, hidden), jnp.float32,
                            -1.0 / jnp.sqrt(fan1), 1.0 / jnp.sqrt(fan1))
    b1 = jax.random.uniform(k2, (1, hidden), jnp.float32,
                            -1.0 / jnp.sqrt(fan1), 1.0 / jnp.sqrt(fan1))
    w2 = jax.random.uniform(k3, (3, 3, hidden, hidden), jnp.float32,
                            -1.0 / jnp.sqrt(fan2), 1.0 / jnp.sqrt(fan2))
    b2 = jax.random.uniform(k4, (1, hidden), jnp.float32,
                            -1.0 / jnp.sqrt(fan2), 1.0 / jnp.sqrt(fan2))
    # PyTorch BatchNorm2d init: weight=1, bias=0
    g1 = jnp.ones((1, hidden), jnp.float32)
    be1 = jnp.zeros((1, hidden), jnp.float32)
    g2 = jnp.ones((1, hidden), jnp.float32)
    be2 = jnp.zeros((1, hidden), jnp.float32)
    return dict(w1=w1, b1=b1, w2=w2, b2=b2, g1=g1, be1=be1, g2=g2, be2=be2)


if __name__ == "__main__":
    key = jax.random.PRNGKey(0)
    k_x, k_p = jax.random.split(key)

    N, C, H, W = 2, 8, 16, 16          # in_feature == hidden_channels == 8
    x = jax.random.normal(k_x, (N, C, H, W), jnp.float32)
    params = init_params(k_p, in_feature=C, hidden=C)

    out = jax.block_until_ready(conv_block_forward(x, params))
    ref = jax.block_until_ready(ref_forward(x, params))

    assert out.shape == (N, C, H, W)
    # bf16 MXU conv operands (f32 accumulation) set the tolerance; BN stats,
    # normalization and the residual path are f32 (stat dots at HIGHEST).
    # The reference keeps the conv bias; the kernel drops it (exact
    # cancellation under batch-stat BN), so this also checks that claim.
    err = float(jnp.max(jnp.abs(out - ref)))
    assert err < 5e-2, f"mismatch vs. JAX reference: {err}"

    print("KERNEL_OK")
</pallas_src>

<mosaic_0001>
module attributes {stable_mosaic.version = 11 : i64} {
  func.func @convblock_kernel(%arg0: i32, %arg1: memref<32x128xf32, #tpu.memory_space<vmem>>, %arg2: memref<384x128xbf16, #tpu.memory_space<vmem>>, %arg3: memref<1x8xf32, #tpu.memory_space<vmem>>, %arg4: memref<1x8xf32, #tpu.memory_space<vmem>>, %arg5: memref<384x128xbf16, #tpu.memory_space<vmem>>, %arg6: memref<1x8xf32, #tpu.memory_space<vmem>>, %arg7: memref<1x8xf32, #tpu.memory_space<vmem>>, %arg8: memref<128x8xf32, #tpu.memory_space<vmem>>, %arg9: memref<8x128xf32, #tpu.memory_space<vmem>>, %arg10: memref<32x128xf32, #tpu.memory_space<vmem>>) attributes {dimension_semantics = [#tpu.dimension_semantics<arbitrary>], iteration_bounds = array<i64: 1>, scalar_prefetch = 0 : i64, scratch_operands = 0 : i64, tpu.core_type = #tpu.core_type<tc>, window_params = [{pipeline_mode = #tpu.pipeline_mode<synchronous>, transform_indices = @transform_0, window_bounds = array<i64: 32, 128>}, {pipeline_mode = #tpu.pipeline_mode<synchronous>, transform_indices = @transform_1, window_bounds = array<i64: 384, 128>}, {pipeline_mode = #tpu.pipeline_mode<synchronous>, transform_indices = @transform_2, window_bounds = array<i64: 1, 8>}, {pipeline_mode = #tpu.pipeline_mode<synchronous>, transform_indices = @transform_3, window_bounds = array<i64: 1, 8>}, {pipeline_mode = #tpu.pipeline_mode<synchronous>, transform_indices = @transform_4, window_bounds = array<i64: 384, 128>}, {pipeline_mode = #tpu.pipeline_mode<synchronous>, transform_indices = @transform_5, window_bounds = array<i64: 1, 8>}, {pipeline_mode = #tpu.pipeline_mode<synchronous>, transform_indices = @transform_6, window_bounds = array<i64: 1, 8>}, {pipeline_mode = #tpu.pipeline_mode<synchronous>, transform_indices = @transform_7, window_bounds = array<i64: 128, 8>}, {pipeline_mode = #tpu.pipeline_mode<synchronous>, transform_indices = @transform_8, window_bounds = array<i64: 8, 128>}, {pipeline_mode = #tpu.pipeline_mode<synchronous>, transform_indices = @transform_9, window_bounds = array<i64: 32, 128>}]} {
    %c0 = arith.constant 0 : index
    %c0_0 = arith.constant 0 : index
    %0 = vector.load %arg8[%c0, %c0_0] : memref<128x8xf32, #tpu.memory_space<vmem>>, vector<128x8xf32>
    %c0_1 = arith.constant 0 : index
    %c0_2 = arith.constant 0 : index
    %1 = vector.load %arg9[%c0_1, %c0_2] : memref<8x128xf32, #tpu.memory_space<vmem>>, vector<8x128xf32>
    %2 = tpu.iota {dimensions = array<i32: 0>} : vector<32x1xi32>
    %c16_i32 = arith.constant 16 : i32
    %c0_i32 = arith.constant 0 : i32
    %3 = arith.cmpi eq, %c16_i32, %c0_i32 : i32
    %c1_i32 = arith.constant 1 : i32
    %4 = arith.select %3, %c1_i32, %c16_i32 : i32
    %5 = vector.broadcast %4 : i32 to vector<32x1xi32>
    %6 = arith.remsi %2, %5 : vector<32x1xi32>
    %c0_i32_3 = arith.constant 0 : i32
    %7 = vector.broadcast %c0_i32_3 : i32 to vector<32x1xi32>
    %8 = arith.cmpi ne, %6, %7 : vector<32x1xi32>
    %c0_i32_4 = arith.constant 0 : i32
    %9 = vector.broadcast %c0_i32_4 : i32 to vector<32x1xi32>
    %10 = arith.cmpi slt, %6, %9 : vector<32x1xi32>
    %c0_i32_5 = arith.constant 0 : i32
    %11 = arith.cmpi slt, %4, %c0_i32_5 : i32
    %12 = vector.broadcast %11 : i1 to vector<32x1xi1>
    %13 = vector.broadcast %12 : vector<32x1xi1> to vector<32x1xi1>
    %14 = arith.xori %10, %13 : vector<32x1xi1>
    %15 = arith.andi %14, %8 : vector<32x1xi1>
    %16 = vector.broadcast %4 : i32 to vector<32x1xi32>
    %17 = arith.addi %6, %16 : vector<32x1xi32>
    %18 = arith.select %15, %17, %6 : vector<32x1xi1>, vector<32x1xi32>
    %c0_i32_6 = arith.constant 0 : i32
    %19 = vector.broadcast %c0_i32_6 : i32 to vector<32x1xi32>
    %20 = arith.cmpi sgt, %18, %19 : vector<32x1xi32>
    %c15_i32 = arith.constant 15 : i32
    %21 = vector.broadcast %c15_i32 : i32 to vector<32x1xi32>
    %22 = arith.cmpi slt, %18, %21 : vector<32x1xi32>
    %c0_7 = arith.constant 0 : index
    %c0_8 = arith.constant 0 : index
    %23 = vector.load %arg1[%c0_7, %c0_8] : memref<32x128xf32, #tpu.memory_space<vmem>>, vector<32x128xf32>
    %c1_i32_9 = arith.constant 1 : i32
    %24 = tpu.dynamic_rotate %23 by %c1_i32_9 dim 0 : vector<32x128xf32>, i32 -> vector<32x128xf32>
    %cst = arith.constant 0.000000e+00 : f32
    %25 = vector.shape_cast %20 : vector<32x1xi1> to vector<32x1xi1>
    %26 = vector.broadcast %25 : vector<32x1xi1> to vector<32x128xi1>
    %27 = vector.broadcast %cst : f32 to vector<32x128xf32>
    %28 = arith.select %26, %24, %27 : vector<32x128xi1>, vector<32x128xf32>
    %c31_i32 = arith.constant 31 : i32
    %29 = tpu.dynamic_rotate %23 by %c31_i32 dim 0 : vector<32x128xf32>, i32 -> vector<32x128xf32>
    %cst_10 = arith.constant 0.000000e+00 : f32
    %30 = vector.shape_cast %22 : vector<32x1xi1> to vector<32x1xi1>
    %31 = vector.broadcast %30 : vector<32x1xi1> to vector<32x128xi1>
    %32 = vector.broadcast %cst_10 : f32 to vector<32x128xf32>
    %33 = arith.select %31, %29, %32 : vector<32x128xi1>, vector<32x128xf32>
    %34 = tpu.concatenate %28, %23, %33 in 1 : vector<32x128xf32>, vector<32x128xf32>, vector<32x128xf32> -> vector<32x384xf32>
    %35 = arith.truncf %34 : vector<32x384xf32> to vector<32x384xbf16>
    %c0_11 = arith.constant 0 : index
    %c0_12 = arith.constant 0 : index
    %36 = vector.load %arg2[%c0_11, %c0_12] : memref<384x128xbf16, #tpu.memory_space<vmem>>, vector<384x128xbf16>
    %cst_13 = arith.constant dense<0.000000e+00> : vector<32x128xf32>
    %37 = tpu.matmul %35, %36, %cst_13 {dimension_numbers = #tpu.dot_dimension_numbers<[1], [0], [0], [1], [0, 0, 1, 1], [], []>} : vector<32x384xbf16>, vector<384x128xbf16>, vector<32x128xf32> -> vector<32x128xf32>
    %c0_14 = arith.constant 0 : index
    %c0_15 = arith.constant 0 : index
    %38 = vector.load %arg3[%c0_14, %c0_15] : memref<1x8xf32, #tpu.memory_space<vmem>>, vector<1x8xf32>
    %c0_16 = arith.constant 0 : index
    %c0_17 = arith.constant 0 : index
    %39 = vector.load %arg4[%c0_16, %c0_17] : memref<1x8xf32, #tpu.memory_space<vmem>>, vector<1x8xf32>
    %cst_18 = arith.constant dense<0.000000e+00> : vector<128xf32>
    %40 = vector.multi_reduction <add>, %37, %cst_18 [0] : vector<32x128xf32> to vector<128xf32>
    %41 = vector.shape_cast %40 : vector<128xf32> to vector<1x128xf32>
    %42 = arith.mulf %37, %37 : vector<32x128xf32>
    %cst_19 = arith.constant dense<0.000000e+00> : vector<128xf32>
    %43 = vector.multi_reduction <add>, %42, %cst_19 [0] : vector<32x128xf32> to vector<128xf32>
    %44 = vector.shape_cast %43 : vector<128xf32> to vector<1x128xf32>
    %45 = tpu.concatenate %41, %44 in 0 : vector<1x128xf32>, vector<1x128xf32> -> vector<2x128xf32>
    %cst_20 = arith.constant dense<0.000000e+00> : vector<2x8xf32>
    %46 = tpu.matmul %45, %0, %cst_20 {dimension_numbers = #tpu.dot_dimension_numbers<[1], [0], [0], [1], [0, 0, 1, 1], [], []>, precision = #tpu.contract_precision<fp32>} : vector<2x128xf32>, vector<128x8xf32>, vector<2x8xf32> -> vector<2x8xf32>
    %47 = vector.extract_strided_slice %46 {offsets = [0, 0], sizes = [1, 8], strides = [1, 1]} : vector<2x8xf32> to vector<1x8xf32>
    %cst_21 = arith.constant 0.001953125 : f32
    %48 = vector.broadcast %cst_21 : f32 to vector<1x8xf32>
    %49 = arith.mulf %47, %48 : vector<1x8xf32>
    %50 = vector.extract_strided_slice %46 {offsets = [1, 0], sizes = [1, 8], strides = [1, 1]} : vector<2x8xf32> to vector<1x8xf32>
    %cst_22 = arith.constant 0.001953125 : f32
    %51 = vector.broadcast %cst_22 : f32 to vector<1x8xf32>
    %52 = arith.mulf %50, %51 : vector<1x8xf32>
    %53 = arith.mulf %49, %49 : vector<1x8xf32>
    %54 = arith.subf %52, %53 : vector<1x8xf32>
    %cst_23 = arith.constant 9.99999974E-6 : f32
    %55 = vector.broadcast %cst_23 : f32 to vector<1x8xf32>
    %56 = arith.addf %54, %55 : vector<1x8xf32>
    %57 = math.rsqrt %56 : vector<1x8xf32>
    %58 = arith.mulf %38, %57 : vector<1x8xf32>
    %59 = arith.mulf %49, %58 : vector<1x8xf32>
    %60 = arith.subf %39, %59 : vector<1x8xf32>
    %61 = tpu.concatenate %58, %60 in 0 : vector<1x8xf32>, vector<1x8xf32> -> vector<2x8xf32>
    %cst_24 = arith.constant dense<0.000000e+00> : vector<2x128xf32>
    %62 = tpu.matmul %61, %1, %cst_24 {dimension_numbers = #tpu.dot_dimension_numbers<[1], [0], [0], [1], [0, 0, 1, 1], [], []>, precision = #tpu.contract_precision<fp32>} : vector<2x8xf32>, vector<8x128xf32>, vector<2x128xf32> -> vector<2x128xf32>
    %63 = vector.extract_strided_slice %62 {offsets = [0, 0], sizes = [1, 128], strides = [1, 1]} : vector<2x128xf32> to vector<1x128xf32>
    %64 = vector.broadcast %63 : vector<1x128xf32> to vector<32x128xf32>
    %65 = arith.mulf %37, %64 : vector<32x128xf32>
    %66 = vector.extract_strided_slice %62 {offsets = [1, 0], sizes = [1, 128], strides = [1, 1]} : vector<2x128xf32> to vector<1x128xf32>
    %67 = vector.broadcast %66 : vector<1x128xf32> to vector<32x128xf32>
    %68 = arith.addf %65, %67 : vector<32x128xf32>
    %cst_25 = arith.constant 0.000000e+00 : f32
    %69 = vector.broadcast %cst_25 : f32 to vector<32x128xf32>
    %70 = arith.maximumf %68, %69 : vector<32x128xf32>
    %c1_i32_26 = arith.constant 1 : i32
    %71 = tpu.dynamic_rotate %70 by %c1_i32_26 dim 0 : vector<32x128xf32>, i32 -> vector<32x128xf32>
    %cst_27 = arith.constant 0.000000e+00 : f32
    %72 = vector.shape_cast %20 : vector<32x1xi1> to vector<32x1xi1>
    %73 = vector.broadcast %72 : vector<32x1xi1> to vector<32x128xi1>
    %74 = vector.broadcast %cst_27 : f32 to vector<32x128xf32>
    %75 = arith.select %73, %71, %74 : vector<32x128xi1>, vector<32x128xf32>
    %c31_i32_28 = arith.constant 31 : i32
    %76 = tpu.dynamic_rotate %70 by %c31_i32_28 dim 0 : vector<32x128xf32>, i32 -> vector<32x128xf32>
    %cst_29 = arith.constant 0.000000e+00 : f32
    %77 = vector.shape_cast %22 : vector<32x1xi1> to vector<32x1xi1>
    %78 = vector.broadcast %77 : vector<32x1xi1> to vector<32x128xi1>
    %79 = vector.broadcast %cst_29 : f32 to vector<32x128xf32>
    %80 = arith.select %78, %76, %79 : vector<32x128xi1>, vector<32x128xf32>
    %81 = tpu.concatenate %75, %70, %80 in 1 : vector<32x128xf32>, vector<32x128xf32>, vector<32x128xf32> -> vector<32x384xf32>
    %82 = arith.truncf %81 : vector<32x384xf32> to vector<32x384xbf16>
    %c0_30 = arith.constant 0 : index
    %c0_31 = arith.constant 0 : index
    %83 = vector.load %arg5[%c0_30, %c0_31] : memref<384x128xbf16, #tpu.memory_space<vmem>>, vector<384x128xbf16>
    %cst_32 = arith.constant dense<0.000000e+00> : vector<32x128xf32>
    %84 = tpu.matmul %82, %83, %cst_32 {dimension_numbers = #tpu.dot_dimension_numbers<[1], [0], [0], [1], [0, 0, 1, 1], [], []>} : vector<32x384xbf16>, vector<384x128xbf16>, vector<32x128xf32> -> vector<32x128xf32>
    %c0_33 = arith.constant 0 : index
    %c0_34 = arith.constant 0 : index
    %85 = vector.load %arg6[%c0_33, %c0_34] : memref<1x8xf32, #tpu.memory_space<vmem>>, vector<1x8xf32>
    %c0_35 = arith.constant 0 : index
    %c0_36 = arith.constant 0 : index
    %86 = vector.load %arg7[%c0_35, %c0_36] : memref<1x8xf32, #tpu.memory_space<vmem>>, vector<1x8xf32>
    %cst_37 = arith.constant dense<0.000000e+00> : vector<128xf32>
    %87 = vector.multi_reduction <add>, %84, %cst_37 [0] : vector<32x128xf32> to vector<128xf32>
    %88 = vector.shape_cast %87 : vector<128xf32> to vector<1x128xf32>
    %89 = arith.mulf %84, %84 : vector<32x128xf32>
    %cst_38 = arith.constant dense<0.000000e+00> : vector<128xf32>
    %90 = vector.multi_reduction <add>, %89, %cst_38 [0] : vector<32x128xf32> to vector<128xf32>
    %91 = vector.shape_cast %90 : vector<128xf32> to vector<1x128xf32>
    %92 = tpu.concatenate %88, %91 in 0 : vector<1x128xf32>, vector<1x128xf32> -> vector<2x128xf32>
    %cst_39 = arith.constant dense<0.000000e+00> : vector<2x8xf32>
    %93 = tpu.matmul %92, %0, %cst_39 {dimension_numbers = #tpu.dot_dimension_numbers<[1], [0], [0], [1], [0, 0, 1, 1], [], []>, precision = #tpu.contract_precision<fp32>} : vector<2x128xf32>, vector<128x8xf32>, vector<2x8xf32> -> vector<2x8xf32>
    %94 = vector.extract_strided_slice %93 {offsets = [0, 0], sizes = [1, 8], strides = [1, 1]} : vector<2x8xf32> to vector<1x8xf32>
    %cst_40 = arith.constant 0.001953125 : f32
    %95 = vector.broadcast %cst_40 : f32 to vector<1x8xf32>
    %96 = arith.mulf %94, %95 : vector<1x8xf32>
    %97 = vector.extract_strided_slice %93 {offsets = [1, 0], sizes = [1, 8], strides = [1, 1]} : vector<2x8xf32> to vector<1x8xf32>
    %cst_41 = arith.constant 0.001953125 : f32
    %98 = vector.broadcast %cst_41 : f32 to vector<1x8xf32>
    %99 = arith.mulf %97, %98 : vector<1x8xf32>
    %100 = arith.mulf %96, %96 : vector<1x8xf32>
    %101 = arith.subf %99, %100 : vector<1x8xf32>
    %cst_42 = arith.constant 9.99999974E-6 : f32
    %102 = vector.broadcast %cst_42 : f32 to vector<1x8xf32>
    %103 = arith.addf %101, %102 : vector<1x8xf32>
    %104 = math.rsqrt %103 : vector<1x8xf32>
    %105 = arith.mulf %85, %104 : vector<1x8xf32>
    %106 = arith.mulf %96, %105 : vector<1x8xf32>
    %107 = arith.subf %86, %106 : vector<1x8xf32>
    %108 = tpu.concatenate %105, %107 in 0 : vector<1x8xf32>, vector<1x8xf32> -> vector<2x8xf32>
    %cst_43 = arith.constant dense<0.000000e+00> : vector<2x128xf32>
    %109 = tpu.matmul %108, %1, %cst_43 {dimension_numbers = #tpu.dot_dimension_numbers<[1], [0], [0], [1], [0, 0, 1, 1], [], []>, precision = #tpu.contract_precision<fp32>} : vector<2x8xf32>, vector<8x128xf32>, vector<2x128xf32> -> vector<2x128xf32>
    %110 = vector.extract_strided_slice %109 {offsets = [0, 0], sizes = [1, 128], strides = [1, 1]} : vector<2x128xf32> to vector<1x128xf32>
    %111 = vector.broadcast %110 : vector<1x128xf32> to vector<32x128xf32>
    %112 = arith.mulf %84, %111 : vector<32x128xf32>
    %113 = vector.extract_strided_slice %109 {offsets = [1, 0], sizes = [1, 128], strides = [1, 1]} : vector<2x128xf32> to vector<1x128xf32>
    %114 = vector.broadcast %113 : vector<1x128xf32> to vector<32x128xf32>
    %115 = arith.addf %112, %114 : vector<32x128xf32>
    %c0_44 = arith.constant 0 : index
    %c0_45 = arith.constant 0 : index
    %116 = vector.load %arg1[%c0_44, %c0_45] : memref<32x128xf32, #tpu.memory_space<vmem>>, vector<32x128xf32>
    %117 = arith.addf %115, %116 : vector<32x128xf32>
    %cst_46 = arith.constant 0.000000e+00 : f32
    %118 = vector.broadcast %cst_46 : f32 to vector<32x128xf32>
    %119 = arith.maximumf %117, %118 : vector<32x128xf32>
    %c0_47 = arith.constant 0 : index
    %c0_48 = arith.constant 0 : index
    %120 = vector.load %arg10[%c0_47, %c0_48] : memref<32x128xf32, #tpu.memory_space<vmem>>, vector<32x128xf32>
    tpu.vector_store %arg10[%c0_47, %c0_48], %119 {strides = array<i32>} : memref<32x128xf32, #tpu.memory_space<vmem>>, vector<32x128xf32>,
    return
  }
  func.func @transform_0(%arg0: i32) -> (i32, i32) {
    %c0_i32 = arith.constant 0 : i32
    %c0_i32_0 = arith.constant 0 : i32
    %c0_i32_1 = arith.constant 0 : i32
    return %c0_i32, %c0_i32_0 : i32, i32
  }
  func.func @transform_1(%arg0: i32) -> (i32, i32) {
    %c0_i32 = arith.constant 0 : i32
    %c0_i32_0 = arith.constant 0 : i32
    %c0_i32_1 = arith.constant 0 : i32
    return %c0_i32, %c0_i32_0 : i32, i32
  }
  func.func @transform_2(%arg0: i32) -> (i32, i32) {
    %c0_i32 = arith.constant 0 : i32
    %c0_i32_0 = arith.constant 0 : i32
    %c0_i32_1 = arith.constant 0 : i32
    return %c0_i32, %c0_i32_0 : i32, i32
  }
  func.func @transform_3(%arg0: i32) -> (i32, i32) {
    %c0_i32 = arith.constant 0 : i32
    %c0_i32_0 = arith.constant 0 : i32
    %c0_i32_1 = arith.constant 0 : i32
    return %c0_i32, %c0_i32_0 : i32, i32
  }
  func.func @transform_4(%arg0: i32) -> (i32, i32) {
    %c0_i32 = arith.constant 0 : i32
    %c0_i32_0 = arith.constant 0 : i32
    %c0_i32_1 = arith.constant 0 : i32
    return %c0_i32, %c0_i32_0 : i32, i32
  }
  func.func @transform_5(%arg0: i32) -> (i32, i32) {
    %c0_i32 = arith.constant 0 : i32
    %c0_i32_0 = arith.constant 0 : i32
    %c0_i32_1 = arith.constant 0 : i32
    return %c0_i32, %c0_i32_0 : i32, i32
  }
  func.func @transform_6(%arg0: i32) -> (i32, i32) {
    %c0_i32 = arith.constant 0 : i32
    %c0_i32_0 = arith.constant 0 : i32
    %c0_i32_1 = arith.constant 0 : i32
    return %c0_i32, %c0_i32_0 : i32, i32
  }
  func.func @transform_7(%arg0: i32) -> (i32, i32) {
    %c0_i32 = arith.constant 0 : i32
    %c0_i32_0 = arith.constant 0 : i32
    %c0_i32_1 = arith.constant 0 : i32
    return %c0_i32, %c0_i32_0 : i32, i32
  }
  func.func @transform_8(%arg0: i32) -> (i32, i32) {
    %c0_i32 = arith.constant 0 : i32
    %c0_i32_0 = arith.constant 0 : i32
    %c0_i32_1 = arith.constant 0 : i32
    return %c0_i32, %c0_i32_0 : i32, i32
  }
  func.func @transform_9(%arg0: i32) -> (i32, i32) {
    %c0_i32 = arith.constant 0 : i32
    %c0_i32_0 = arith.constant 0 : i32
    %c0_i32_1 = arith.constant 0 : i32
    return %c0_i32, %c0_i32_0 : i32, i32
  }
}

</mosaic_0001>

<bundles_post_ra>
// kernel: tile.9
= control target key start
LH: loop header
LB: loop body
LE: loop exit
PB: predicated region body
PF: predicated region fallthrough
CT: control target
= control target key end

     0   :  { %vm6_vm0 = vcmask 1043458   ;;  %vm10_vm1 = vcmask 1045508   ;;  %vm14_vm2 = vcmask 1047558   ;;  %s19_s6 = smov 3  ;;  %s22_s7 = smov 12  ;;  %vm16_vm3 = vcmask 64512   ;;  %s736_s0 = inlined_call_operand.vmem [shape: f32[16,8,8], index: 0, kind: input, shape index: {}]   ;;  %s737_s1 = inlined_call_operand.vmem [shape: f32[128,8], index: 1, kind: output, shape index: {}]  }
   0x1   :  { %v348_v0 = vld [vmem:[%s736_s0 + $0xf] ss:$16 sm:%s19_s6]   ;;  %s27_s12 = smov 48  ;;  %s32_s13 = smov 192  ;;  %vm38_vm4 = vcmask 1048512   ;;  %vm60_vm5 = vcmask 982912  }
   0x2   :  { %v349_v1 = vld [vmem:[%s736_s0 + $0xf] ss:$16 sm:%s22_s7]   ;;  %s63_s18 = smov 3  ;;  %s66_s21 = smov 12  ;;  %vm82_vm6 = vcmask 917312   ;;  %vm104_vm7 = vcmask 851712  }
   0x3   :  { %v25_v2 = vsel %vm6_vm0, %v349_v1, %v348_v0  ;;  %v350_v3 = vld [vmem:[%s736_s0 + $0xf] ss:$16 sm:%s27_s12]   ;;  %v356_v6 = vld [vmem:[%s736_s0 + $0xd] ss:$16 sm:%s63_s18]   ;;  %s71_s22 = smov 48  ;;  %s76_s27 = smov 192 }
   0x4   :  { %v351_v4 = vld [vmem:[%s736_s0 + $0xf] ss:$16 sm:%s32_s13]   ;;  %v30_v5 = vsel %vm10_vm1, %v350_v3, %v25_v2  ;;  %v357_v8 = vld [vmem:[%s736_s0 + $0xd] ss:$16 sm:%s66_s21]   ;;  %s423_s28 = smov 120   ;;  %s41_s2 = smov 3 }
   0x5   :  { %v35_v7 = vsel %vm14_vm2, %v351_v4, %v30_v5  ;;  %v358_v9 = vld [vmem:[%s736_s0 + $0xd] ss:$16 sm:%s71_s22]   ;;  %v69_v10 = vsel %vm6_vm0, %v357_v8, %v356_v6  ;;  %s44_s3 = smov 12  ;;  %v352_v13 = vld [vmem:[%s736_s0 + $0xe] ss:$16 sm:%s41_s2]   ;;  %s49_s8 = smov 48 }
   0x6   :  { %36 = vrot.lane.b32.xlu0 %v35_v7, %s423_s28  ;;  %v359_v11 = vld [vmem:[%s736_s0 + $0xd] ss:$16 sm:%s76_s27]   ;;  %v74_v12 = vsel %vm10_vm1, %v358_v9, %v69_v10  ;;  %s54_s9 = smov 192  ;;  %s85_s14 = smov 3  ;;  %vm126_vm8 = vcmask 786112   ;;  %vm148_vm9 = vcmask 720512  }
   0x7   :  { %v353_v14 = vld [vmem:[%s736_s0 + $0xe] ss:$16 sm:%s44_s3]   ;;  %v79_v15 = vsel %vm14_vm2, %v359_v11, %v74_v12  ;;  %s424_s15 = smov 104   ;;  %v360_v20 = vld [vmem:[%s736_s0 + $0xc] ss:$16 sm:%s85_s14]   ;;  %s88_s18 = smov 12 }
   0x8   :  { %v47_v16 = vsel %vm6_vm0, %v353_v14, %v352_v13  ;;  %v354_v17 = vld [vmem:[%s736_s0 + $0xe] ss:$16 sm:%s49_s8]   ;;  %80 = vrot.lane.b32.xlu1 %v79_v15, %s424_s15  ;;  %s93_s19 = smov 48  ;;  %s98_s24 = smov 192  ;;  %vm170_vm10 = vcmask 654912   ;;  %vm192_vm11 = vcmask 589312  }
   0x9   :  { %v355_v18 = vld [vmem:[%s736_s0 + $0xe] ss:$16 sm:%s54_s9]   ;;  %v52_v19 = vsel %vm10_vm1, %v354_v17, %v47_v16  ;;  %v361_v22 = vld [vmem:[%s736_s0 + $0xc] ss:$16 sm:%s88_s18]   ;;  %s425_s25 = smov 112   ;;  %s107_s28 = smov 3 }
   0xa   :  { %v57_v21 = vsel %vm14_vm2, %v355_v18, %v52_v19  ;;  %v362_v23 = vld [vmem:[%s736_s0 + $0xc] ss:$16 sm:%s93_s19]   ;;  %v91_v24 = vsel %vm6_vm0, %v361_v22, %v360_v20  ;;  %s110_s29 = smov 12  ;;  %v364_v27 = vld [vmem:[%s736_s0 + $0xb] ss:$16 sm:%s107_s28]   ;;  %s115_s5 = smov 48 }
   0xb   :  { %58 = vrot.lane.b32.xlu0 %v57_v21, %s425_s25  ;;  %v363_v25 = vld [vmem:[%s736_s0 + $0xc] ss:$16 sm:%s98_s24]   ;;  %v96_v26 = vsel %vm10_vm1, %v362_v23, %v91_v24  ;;  %s120_s6 = smov 192  ;;  %s129_s11 = smov 3  ;;  %vm214_vm12 = vcmask 523712   ;;  %vm236_vm13 = vcmask 458112  }
   0xc   :  { %v365_v28 = vld [vmem:[%s736_s0 + $0xb] ss:$16 sm:%s110_s29]   ;;  %v101_v29 = vsel %vm14_vm2, %v363_v25, %v96_v26  ;;  %s426_s12 = smov 96   ;;  %v368_v34 = vld [vmem:[%s736_s0 + $0xa] ss:$16 sm:%s129_s11]   ;;  %s132_s15 = smov 12 }
   0xd   :  { %v113_v30 = vsel %vm6_vm0, %v365_v28, %v364_v27  ;;  %v366_v31 = vld [vmem:[%s736_s0 + $0xb] ss:$16 sm:%s115_s5]   ;;  %102 = vrot.lane.b32.xlu1 %v101_v29, %s426_s12  ;;  %s137_s16 = smov 48  ;;  %s142_s21 = smov 192  ;;  %vm258_vm14 = vcmask 392512   ;;  %vm280_vm15 = vcmask 326912  }
   0xe   :  { %v367_v32 = vld [vmem:[%s736_s0 + $0xb] ss:$16 sm:%s120_s6]   ;;  %v118_v33 = vsel %vm10_vm1, %v366_v31, %v113_v30  ;;  %v369_v36 = vld [vmem:[%s736_s0 + $0xa] ss:$16 sm:%s132_s15]   ;;  %s427_s22 = smov 88   ;;  %s151_s25 = smov 3 }
   0xf   :  { %v123_v35 = vsel %vm14_vm2, %v367_v32, %v118_v33  ;;  %v370_v37 = vld [vmem:[%s736_s0 + $0xa] ss:$16 sm:%s137_s16]   ;;  %v135_v38 = vsel %vm6_vm0, %v369_v36, %v368_v34  ;;  %s154_s26 = smov 12  ;;  %v372_v41 = vld [vmem:[%s736_s0 + $0x9] ss:$16 sm:%s151_s25]   ;;  %s159_s2 = smov 48 }
  0x10   :  { %124 = vrot.lane.b32.xlu0 %v123_v35, %s427_s22  ;;  %v371_v39 = vld [vmem:[%s736_s0 + $0xa] ss:$16 sm:%s142_s21]   ;;  %v140_v40 = vsel %vm10_vm1, %v370_v37, %v135_v38  ;;  %s164_s3 = smov 192  ;;  %s173_s8 = smov 3 }
  0x11   :  { %v373_v42 = vld [vmem:[%s736_s0 + $0x9] ss:$16 sm:%s154_s26]   ;;  %v145_v43 = vsel %vm14_vm2, %v371_v39, %v140_v40  ;;  %s428_s9 = smov 80   ;;  %v376_v48 = vld [vmem:[%s736_s0 + $0x8] ss:$16 sm:%s173_s8]   ;;  %s176_s12 = smov 12 }
  0x12   :  { %v157_v44 = vsel %vm6_vm0, %v373_v42, %v372_v41  ;;  %v374_v45 = vld [vmem:[%s736_s0 + $0x9] ss:$16 sm:%s159_s2]   ;;  %146 = vrot.lane.b32.xlu1 %v145_v43, %s428_s9  ;;  %s181_s13 = smov 48  ;;  %s186_s18 = smov 192 }
  0x13   :  { %v375_v46 = vld [vmem:[%s736_s0 + $0x9] ss:$16 sm:%s164_s3]   ;;  %v162_v47 = vsel %vm10_vm1, %v374_v45, %v157_v44  ;;  %v377_v50 = vld [vmem:[%s736_s0 + $0x8] ss:$16 sm:%s176_s12]   ;;  %s429_s19 = smov 72   ;;  %s195_s22 = smov 3 }
  0x14   :  { %v167_v49 = vsel %vm14_vm2, %v375_v46, %v162_v47  ;;  %v378_v51 = vld [vmem:[%s736_s0 + $0x8] ss:$16 sm:%s181_s13]   ;;  %v179_v52 = vsel %vm6_vm0, %v377_v50, %v376_v48  ;;  %s198_s23 = smov 12  ;;  %v380_v55 = vld [vmem:[%s736_s0 + $0x7] ss:$16 sm:%s195_s22]   ;;  %s203_s28 = smov 48 }
  0x15   :  { %168 = vrot.lane.b32.xlu0 %v167_v49, %s429_s19  ;;  %v379_v53 = vld [vmem:[%s736_s0 + $0x8] ss:$16 sm:%s186_s18]   ;;  %v184_v54 = vsel %vm10_vm1, %v378_v51, %v179_v52  ;;  %s208_s29 = smov 192  ;;  %s217_s5 = smov 3 }
  0x16   :  { %v381_v56 = vld [vmem:[%s736_s0 + $0x7] ss:$16 sm:%s198_s23]   ;;  %v189_v57 = vsel %vm14_vm2, %v379_v53, %v184_v54  ;;  %s430_s6 = smov 64   ;;  %v384_v62 = vld [vmem:[%s736_s0 + $0x6] ss:$16 sm:%s217_s5]   ;;  %s220_s9 = smov 12 }
  0x17   :  { %v201_v58 = vsel %vm6_vm0, %v381_v56, %v380_v55  ;;  %v382_v59 = vld [vmem:[%s736_s0 + $0x7] ss:$16 sm:%s203_s28]   ;;  %190 = vrot.lane.b32.xlu1 %v189_v57, %s430_s6  ;;  %s225_s10 = smov 48  ;;  %s230_s15 = smov 192 }
  0x18   :  { %v383_v60 = vld [vmem:[%s736_s0 + $0x7] ss:$16 sm:%s208_s29]   ;;  %v206_v61 = vsel %vm10_vm1, %v382_v59, %v201_v58  ;;  %v385_v0 = vld [vmem:[%s736_s0 + $0x6] ss:$16 sm:%s220_s9]   ;;  %s431_s16 = smov 56   ;;  %s239_s19 = smov 3 }
  0x19   :  { %v211_v63 = vsel %vm14_vm2, %v383_v60, %v206_v61  ;;  %v386_v1 = vld [vmem:[%s736_s0 + $0x6] ss:$16 sm:%s225_s10]   ;;  %v223_v2 = vsel %vm6_vm0, %v385_v0, %v384_v62  ;;  %s242_s20 = smov 12  ;;  %v388_v5 = vld [vmem:[%s736_s0 + $0x5] ss:$16 sm:%s239_s19]   ;;  %s247_s25 = smov 48 }
  0x1a   :  { %212 = vrot.lane.b32.xlu0 %v211_v63, %s431_s16  ;;  %v387_v3 = vld [vmem:[%s736_s0 + $0x6] ss:$16 sm:%s230_s15]   ;;  %v228_v4 = vsel %vm10_vm1, %v386_v1, %v223_v2  ;;  %s252_s26 = smov 192  ;;  %s261_s2 = smov 3 }
  0x1b   :  { %v389_v6 = vld [vmem:[%s736_s0 + $0x5] ss:$16 sm:%s242_s20]   ;;  %v233_v7 = vsel %vm14_vm2, %v387_v3, %v228_v4  ;;  %s432_s3 = smov 48   ;;  %v392_v12 = vld [vmem:[%s736_s0 + $0x4] ss:$16 sm:%s261_s2]   ;;  %s264_s6 = smov 12 }
  0x1c   :  { %v245_v8 = vsel %vm6_vm0, %v389_v6, %v388_v5  ;;  %v390_v9 = vld [vmem:[%s736_s0 + $0x5] ss:$16 sm:%s247_s25]   ;;  %234 = vrot.lane.b32.xlu1 %v233_v7, %s432_s3  ;;  %s269_s7 = smov 48  ;;  %s274_s12 = smov 192 }
  0x1d   :  { %v391_v10 = vld [vmem:[%s736_s0 + $0x5] ss:$16 sm:%s252_s26]   ;;  %v250_v11 = vsel %vm10_vm1, %v390_v9, %v245_v8  ;;  %v393_v14 = vld [vmem:[%s736_s0 + $0x4] ss:$16 sm:%s264_s6]   ;;  %s433_s13 = smov 40   ;;  %s283_s16 = smov 3 }
  0x1e   :  { %v255_v13 = vsel %vm14_vm2, %v391_v10, %v250_v11  ;;  %v394_v15 = vld [vmem:[%s736_s0 + $0x4] ss:$16 sm:%s269_s7]   ;;  %v267_v16 = vsel %vm6_vm0, %v393_v14, %v392_v12  ;;  %s286_s17 = smov 12  ;;  %v396_v19 = vld [vmem:[%s736_s0 + $0x3] ss:$16 sm:%s283_s16]   ;;  %s291_s22 = smov 48 }
  0x1f   :  { %256 = vrot.lane.b32.xlu0 %v255_v13, %s433_s13  ;;  %v395_v17 = vld [vmem:[%s736_s0 + $0x4] ss:$16 sm:%s274_s12]   ;;  %v272_v18 = vsel %vm10_vm1, %v394_v15, %v267_v16  ;;  %s296_s23 = smov 192  ;;  %s305_s28 = smov 3 }
  0x20   :  { %v397_v20 = vld [vmem:[%s736_s0 + $0x3] ss:$16 sm:%s286_s17]   ;;  %v277_v21 = vsel %vm14_vm2, %v395_v17, %v272_v18  ;;  %s434_s29 = smov 32   ;;  %v400_v26 = vld [vmem:[%s736_s0 + $0x2] ss:$16 sm:%s305_s28]   ;;  %s308_s3 = smov 12 }
  0x21   :  { %v289_v22 = vsel %vm6_vm0, %v397_v20, %v396_v19  ;;  %v398_v23 = vld [vmem:[%s736_s0 + $0x3] ss:$16 sm:%s291_s22]   ;;  %278 = vrot.lane.b32.xlu1 %v277_v21, %s434_s29  ;;  %s313_s4 = smov 48  ;;  %s318_s9 = smov 192 }
  0x22   :  { %v399_v24 = vld [vmem:[%s736_s0 + $0x3] ss:$16 sm:%s296_s23]   ;;  %v294_v25 = vsel %vm10_vm1, %v398_v23, %v289_v22  ;;  %v401_v28 = vld [vmem:[%s736_s0 + $0x2] ss:$16 sm:%s308_s3]   ;;  %s435_s10 = smov 24   ;;  %s327_s13 = smov 3 }
  0x23   :  { %v299_v27 = vsel %vm14_vm2, %v399_v24, %v294_v25  ;;  %v402_v29 = vld [vmem:[%s736_s0 + $0x2] ss:$16 sm:%s313_s4]   ;;  %v311_v30 = vsel %vm6_vm0, %v401_v28, %v400_v26  ;;  %s330_s14 = smov 12  ;;  %v404_v33 = vld [vmem:[%s736_s0 + $0x1] ss:$16 sm:%s327_s13]   ;;  %s335_s19 = smov 48 }
  0x24   :  { %300 = vrot.lane.b32.xlu0 %v299_v27, %s435_s10  ;;  %v403_v31 = vld [vmem:[%s736_s0 + $0x2] ss:$16 sm:%s318_s9]   ;;  %v316_v32 = vsel %vm10_vm1, %v402_v29, %v311_v30  ;;  %s340_s20 = smov 192  ;;  %s2_s25 = smov 3 }
  0x25   :  { %v405_v34 = vld [vmem:[%s736_s0 + $0x1] ss:$16 sm:%s330_s14]   ;;  %v321_v35 = vsel %vm14_vm2, %v403_v31, %v316_v32  ;;  %s436_s26 = smov 16   ;;  %s4_s27 = smov 12  ;;  %v3_v40 = vld [vmem:[%s736_s0] ss:$16 sm:%s2_s25]  }
  0x26   :  { %v333_v36 = vsel %vm6_vm0, %v405_v34, %v404_v33  ;;  %v406_v37 = vld [vmem:[%s736_s0 + $0x1] ss:$16 sm:%s335_s19]   ;;  %322 = vrot.lane.b32.xlu1 %v321_v35, %s436_s26  ;;  %s8_s28 = smov 48  ;;  %s12_s2 = smov 192 }
  0x27   :  { %v407_v38 = vld [vmem:[%s736_s0 + $0x1] ss:$16 sm:%s340_s20]   ;;  %v338_v39 = vsel %vm10_vm1, %v406_v37, %v333_v36  ;;  %v5_v42 = vld [vmem:[%s736_s0] ss:$16 sm:%s4_s27]   ;;  %s437_s7 = smov 8  }
  0x28   :  { %v343_v41 = vsel %vm14_vm2, %v407_v38, %v338_v39  ;;  %v9_v43 = vld [vmem:[%s736_s0] ss:$16 sm:%s8_s28]   ;;  %v7_v44 = vsel %vm6_vm0, %v5_v42, %v3_v40  ;;  %vm302_vm0 = vcmask 261312  }
  0x29   :  { %344 = vrot.lane.b32.xlu0 %v343_v41, %s437_s7  ;;  %v13_v45 = vld [vmem:[%s736_s0] ss:$16 sm:%s12_s2]   ;;  %v11_v46 = vsel %vm10_vm1, %v9_v43, %v7_v44  ;;  %vm324_vm1 = vcmask 195712  }
  0x2a   :  { %v15_v47 = vsel %vm14_vm2, %v13_v45, %v11_v46  ;;  %vm346_vm2 = vcmask 130112  }
  0x2b   :  { %17 = vst.msk [vmem:[%s737_s1] sm:$0xff] %vm16_vm3, %v15_v47  }
  0x78   :  { %v37_v48 = vpop.permute.xlu0 %36  }
  0x79   :  { %39 = vst.msk [vmem:[%s737_s1] sm:$0xff] %vm38_vm4, %v37_v48  }
  0x7a   :  { %v81_v49 = vpop.permute.xlu1 %80  }
  0x7d   :  { %v59_v50 = vpop.permute.xlu0 %58  }
  0x7e   :  { %61 = vst.msk [vmem:[%s737_s1] sm:$0xff] %vm60_vm5, %v59_v50  }
  0x7f   :  { %83 = vst.msk [vmem:[%s737_s1] sm:$0xff] %vm82_vm6, %v81_v49   ;;  %v103_v51 = vpop.permute.xlu1 %102  }
  0x80   :  { %105 = vst.msk [vmem:[%s737_s1] sm:$0xff] %vm104_vm7, %v103_v51  }
  0x82   :  { %v125_v52 = vpop.permute.xlu0 %124  }
  0x83   :  { %127 = vst.msk [vmem:[%s737_s1] sm:$0xff] %vm126_vm8, %v125_v52  }
  0x84   :  { %v147_v53 = vpop.permute.xlu1 %146  }
  0x85   :  { %149 = vst.msk [vmem:[%s737_s1] sm:$0xff] %vm148_vm9, %v147_v53  }
  0x87   :  { %v169_v54 = vpop.permute.xlu0 %168  }
  0x88   :  { %171 = vst.msk [vmem:[%s737_s1] sm:$0xff] %vm170_vm10, %v169_v54  }
  0x89   :  { %v191_v55 = vpop.permute.xlu1 %190  }
  0x8a   :  { %193 = vst.msk [vmem:[%s737_s1] sm:$0xff] %vm192_vm11, %v191_v55  }
  0x8c   :  { %v213_v56 = vpop.permute.xlu0 %212  }
  0x8d   :  { %215 = vst.msk [vmem:[%s737_s1] sm:$0xff] %vm214_vm12, %v213_v56  }
  0x8e   :  { %v235_v57 = vpop.permute.xlu1 %234  }
  0x8f   :  { %237 = vst.msk [vmem:[%s737_s1] sm:$0xff] %vm236_vm13, %v235_v57  }
  0x91   :  { %v257_v58 = vpop.permute.xlu0 %256  }
  0x92   :  { %259 = vst.msk [vmem:[%s737_s1] sm:$0xff] %vm258_vm14, %v257_v58  }
  0x93   :  { %v279_v59 = vpop.permute.xlu1 %278  }
  0x94   :  { %281 = vst.msk [vmem:[%s737_s1] sm:$0xff] %vm280_vm15, %v279_v59  }
  0x96   :  { %v301_v60 = vpop.permute.xlu0 %300  }
  0x97   :  { %303 = vst.msk [vmem:[%s737_s1] sm:$0xff] %vm302_vm0, %v301_v60  }
  0x98   :  { %v323_v61 = vpop.permute.xlu1 %322  }
  0x99   :  { %325 = vst.msk [vmem:[%s737_s1] sm:$0xff] %vm324_vm1, %v323_v61  }
  0x9b   :  { %v345_v62 = vpop.permute.xlu0 %344  }
  0x9c   :  { %347 = vst.msk [vmem:[%s737_s1] sm:$0xff] %vm346_vm2, %v345_v62  }

// kernel: conv_block_forward.1
= control target key start
LH: loop header
LB: loop body
LE: loop exit
PB: predicated region body
PF: predicated region fallthrough
CT: control target
= control target key end

     0   :  { %v50_v8 = vlaneseq  ;;  %vm4083_vm3 = vmmov 1   ;;  %v5281_v47 = vmov 0  ;;  %v5284_v53 = vmov 0  ;;  %s5217_s1 = inlined_call_operand.vmem [shape: bf16[384,128], index: 1, kind: input, shape index: {}]   ;;  %s5218_s0 = inlined_call_operand.vmem [shape: f32[32,128], index: 0, kind: input, shape index: {}]   ;;  %s5219_s7 = inlined_call_operand.vmem [shape: f32[128,8], index: 7, kind: input, shape index: {}]   ;;  %s5220_s8 = inlined_call_operand.vmem [shape: f32[8,128], index: 8, kind: input, shape index: {}]   ;;  %s5221_s2 = inlined_call_operand.vmem [shape: f32[1,8], index: 2, kind: input, shape index: {}]   ;;  %s5222_s3 = inlined_call_operand.vmem [shape: f32[1,8], index: 3, kind: input, shape index: {}]   ;;  %s5223_s4 = inlined_call_operand.vmem [shape: bf16[384,128], index: 4, kind: input, shape index: {}]   ;;  %s5224_s5 = inlined_call_operand.vmem [shape: f32[1,8], index: 5, kind: input, shape index: {}]   ;;  %s5225_s6 = inlined_call_operand.vmem [shape: f32[1,8], index: 6, kind: input, shape index: {}]   ;;  %s5226_s9 = inlined_call_operand.vmem [shape: f32[32,128], index: 9, kind: output, shape index: {}]  }
   0x1   :  { %v4027_v0 = vld [vmem:[%s5217_s1 + $0x78] sm:$0xff]   ;;  %v4030_v3 = vld [vmem:[%s5217_s1 + $0x70] sm:$0xff]   ;;  %v4033_v6 = vld [vmem:[%s5217_s1 + $0x68] sm:$0xff]   ;;  %v5287_v56 = vmov 0  ;;  %v5290_v63 = vmov 0  ;;  %vm4085_vm11 = vmmov 0  }
   0x2   :  { %v4028_v1 = vld [vmem:[%s5217_s1 + $0xb8] sm:$0xff]   ;;  %3199 = vmatprep.subr.bf16.mxu0 %v4027_v0  ;;  %v4031_v4 = vld [vmem:[%s5217_s1 + $0xb0] sm:$0xff]   ;;  %v4034_v7 = vld [vmem:[%s5217_s1 + $0xa8] sm:$0xff]   ;;  %v4173_v13 = vshrl.u32 %v50_v8, 7  ;;  %vm477_vm12 = vcmask 1040384   ;;  %vm1155_vm13 = vcmask 64512  }
   0x3   :  { %v4029_v2 = vld [vmem:[%s5217_s1 + $0x38] sm:$0xff]   ;;  %3503 = vmatprep.subr.bf16.mxu1 %v4028_v1  ;;  %v4032_v5 = vld [vmem:[%s5217_s1 + $0x30] sm:$0xff]   ;;  %v4035_v9 = vld [vmem:[%s5217_s1 + $0x28] sm:$0xff]  }
   0x4   :  { %3200 = vmatpush3.bf16.msra.mxu0 %v4029_v2  ;;  %3504 = vmatpush3.bf16.msra.mxu1 %v4028_v1  ;;  %v4036_v10 = vld [vmem:[%s5217_s1 + $0x60] sm:$0xff]   ;;  %5278 = vst [vmem:[#allocation2_spill] sm:$0xff] %v4173_v13  ;;  %v4039_v14 = vld [vmem:[%s5217_s1 + $0x58] sm:$0xff]   ;;  %v52_v17 = vadd.s32 8, %v4173_v13  ;;  %v4042_v18 = vld [vmem:[%s5217_s1 + $0x50] sm:$0xff]   ;;  %v54_v23 = vadd.s32 24, %v4173_v13 }
   0x5   :  { %3201 = vmatprep.subr.bf16.mxu0 %v4030_v3  ;;  %3505 = vmatprep.subr.bf16.mxu1 %v4031_v4  ;;  %v4037_v11 = vld [vmem:[%s5217_s1 + $0xa0] sm:$0xff]   ;;  %v4040_v15 = vld [vmem:[%s5217_s1 + $0x98] sm:$0xff]   ;;  %v4043_v19 = vld [vmem:[%s5217_s1 + $0x90] sm:$0xff]   ;;  %vm140_vm0 = vcmp.lt.s32.totalorder %v4173_v13, 7  ;;  %v59_v26 = vand.u32 15, %v4173_v13  ;;  %vm119_vm2 = vcmp.lt.s32.totalorder %v4173_v13, 1 }
   0x6   :  { %v4038_v12 = vld [vmem:[%s5217_s1 + $0x20] sm:$0xff]   ;;  %v4041_v16 = vld [vmem:[%s5217_s1 + $0x18] sm:$0xff]   ;;  %v4044_v20 = vld [vmem:[%s5217_s1 + $0x10] sm:$0xff]   ;;  %v66_v21 = vand.u32 15, %v52_v17  ;;  %v80_v31 = vand.u32 15, %v54_v23  ;;  %v53_v51 = vadd.s32 16, %v4173_v13 }
   0x7   :  { %v4045_v22 = vld [vmem:[%s5217_s1 + $0x48] sm:$0xff]   ;;  %v111_v27 = vld [vmem:[%s5218_s0] sm:$0xff]  ;;  %v114_v29 = vld [vmem:[%s5218_s0 + $0x18] sm:$0xff]  ;;  %vm103_vm5 = vcmp.gt.s32.totalorder %v59_v26, 0 }
   0x8   :  { %3202 = vmatpush3.bf16.msra.mxu0 %v4032_v5  ;;  %3506 = vmatpush3.bf16.msra.mxu1 %v4031_v4  ;;  %v4046_v24 = vld [vmem:[%s5217_s1 + $0x88] sm:$0xff]   ;;  %vm4215_vm1 = vcmp.lt.s32.totalorder %v66_v21, 15  ;;  %v4048_v32 = vld [vmem:[%s5217_s1 + $0x40] sm:$0xff]   ;;  %v115_v34 = vrot.slane %v111_v27, 7  ;;  %v113_v37 = vld [vmem:[%s5218_s0 + $0x10] sm:$0xff]  ;;  %v136_v38 = vrot.slane %v111_v27, 1 }
   0x9   :  { %3203 = vmatprep.subr.bf16.mxu0 %v4033_v6  ;;  %3507 = vmatprep.subr.bf16.mxu1 %v4034_v7  ;;  %v4047_v25 = vld [vmem:[%s5217_s1 + $0x8] sm:$0xff]   ;;  %v4049_v33 = vld [vmem:[%s5217_s1 + $0x80] sm:$0xff]   ;;  %v138_v40 = vrot.slane %v113_v37, 1  ;;  %v118_v41 = vrot.slane %v114_v29, 7  ;;  %v139_v42 = vrot.slane %v114_v29, 1  ;;  %vm4241_vm4 = vmpackc.low %vm4215_vm1, %vm4083_vm3  ;;  %vm110_vm6 = vcmp.lt.s32.totalorder %v80_v31, 15 }
   0xa   :  { %v112_v28 = vld [vmem:[%s5218_s0 + $0x8] sm:$0xff]  ;;  %v4050_v44 = vld [vmem:[%s5217_s1] sm:$0xff]   ;;  %v5282_v47 = vsel %vm4241_vm4, 4294967295, %v5281_v47  ;;  %vm4255_vm7 = vmpackc.low %vm4083_vm3, %vm103_vm5  ;;  %v161_v57 = vpack.c.bf16 %v114_v29, %v113_v37  ;;  %v117_v58 = vrot.slane %v113_v37, 7  ;;  %v73_v59 = vand.u32 15, %v53_v51 }
   0xb   :  { %v116_v35 = vrot.slane %v112_v28, 7  ;;  %v158_v36 = vpack.c.bf16 %v112_v28, %v111_v27  ;;  %v137_v39 = vrot.slane %v112_v28, 1  ;;  %5283 = vst [vmem:[#allocation3_spill] sm:$0xff] %v5282_v47  ;;  %v123_v48 = vsel %vm119_vm2, %v118_v41, %v115_v34  ;;  %vm4260_vm8 = vmpackc.low %vm110_vm6, %vm4083_vm3  ;;  %v48_v0 = vld [vmem:[%s5219_s7 + $0x78] sm:$0xff]  ;;  %v47_v2 = vld [vmem:[%s5219_s7 + $0x70] sm:$0xff] }
   0xc   :  { %3204 = vmatpush3.bf16.msra.mxu0 %v4035_v9  ;;  %3508 = vmatpush3.bf16.msra.mxu1 %v4034_v7  ;;  %v141_v50 = vsel %vm140_vm0, %v138_v40, %v139_v42  ;;  %v144_v52 = vsel %vm140_vm0, %v139_v42, %v136_v38  ;;  %v5285_v53 = vsel %vm4255_vm7, 4294967295, %v5284_v53  ;;  %v5288_v56 = vsel %vm4260_vm8, 4294967295, %v5287_v56  ;;  %v46_v5 = vld [vmem:[%s5219_s7 + $0x68] sm:$0xff]  ;;  %v45_v9 = vld [vmem:[%s5219_s7 + $0x60] sm:$0xff] }
   0xd   :  { %3205 = vmatprep.subr.bf16.mxu0 %v4036_v10  ;;  %3509 = vmatprep.subr.bf16.mxu1 %v4037_v11  ;;  %v122_v43 = vsel %vm119_vm2, %v115_v34, %v116_v35  ;;  %v142_v45 = vsel %vm140_vm0, %v137_v39, %v138_v40  ;;  %v143_v46 = vsel %vm140_vm0, %v136_v38, %v137_v39  ;;  %vm105_vm9 = vcmp.gt.s32.totalorder %v73_v59, 0  ;;  %v42_v28 = vld [vmem:[%s5219_s7 + $0x48] sm:$0xff]  ;;  %v41_v34 = vld [vmem:[%s5219_s7 + $0x40] sm:$0xff]  ;;  %v40_v40 = vld [vmem:[%s5219_s7 + $0x38] sm:$0xff] }
   0xe   :  { %387 = vmatprep.mubr.bf16.mxu0 %v158_v36  ;;  %v3158_v49 = vpack.c.bf16 %v142_v45, %v143_v46  ;;  %5286 = vst [vmem:[#allocation4_spill] sm:$0xff] %v5285_v53  ;;  %v3152_v54 = vpack.c.bf16 %v122_v43, %v123_v48  ;;  %v3161_v55 = vpack.c.bf16 %v144_v52, %v141_v50  ;;  %5289 = vst [vmem:[#allocation5_spill] sm:$0xff] %v5288_v56  ;;  %v39_v46 = vld [vmem:[%s5219_s7 + $0x30] sm:$0xff] }
   0xf   :  { %v120_v60 = vsel %vm119_vm2, %v117_v58, %v118_v41  ;;  %v121_v61 = vsel %vm119_vm2, %v116_v35, %v117_v58  ;;  %vm4273_vm10 = vmpackc.low %vm4083_vm3, %vm105_vm9  ;;  %v4282_v1 = vand.u32 4294901760, %v48_v0  ;;  %v4290_v4 = vand.u32 4294901760, %v47_v2 }
  0x10   :  { %3206 = vmatpush3.bf16.msra.mxu0 %v4038_v12  ;;  %3510 = vmatpush3.bf16.msra.mxu1 %v4037_v11  ;;  %v3155_v62 = vpack.c.bf16 %v120_v60, %v121_v61  ;;  %v5291_v63 = vsel %vm4273_vm10, 4294967295, %v5290_v63  ;;  %v4301_v8 = vand.u32 4294901760, %v46_v5  ;;  %v4362_v31 = vand.u32 4294901760, %v42_v28  ;;  %v37_v61 = vld [vmem:[%s5219_s7 + $0x20] sm:$0xff] }
  0x11   :  { %3207 = vmatprep.subr.bf16.mxu0 %v4039_v14  ;;  %3511 = vmatprep.subr.bf16.mxu1 %v4040_v15  ;;  %5292 = vst [vmem:[#allocation6_spill] sm:$0xff] %v5291_v63  ;;  %v4288_v3 = vsub.f32 %v48_v0, %v4282_v1  ;;  %v4299_v7 = vsub.f32 %v47_v2, %v4290_v4  ;;  %v4314_v14 = vand.u32 4294901760, %v45_v9  ;;  %v4382_v37 = vand.u32 4294901760, %v41_v34 }
  0x12   :  { %3519 = vmatprep.mubr.msk.bf16.mxu1 %vm4241_vm4, %v3158_v49  ;;  %v4312_v12 = vsub.f32 %v46_v5, %v4301_v8  ;;  %v4380_v36 = vsub.f32 %v42_v28, %v4362_v31  ;;  %v4425_v52 = vand.u32 4294901760, %v39_v46  ;;  %v4458_v5 = vand.u32 4294901760, %v37_v61 }
  0x13   :  { %v4296_v6 = vand.u32 4294901760, %v4288_v3  ;;  %v4309_v11 = vand.u32 4294901760, %v4299_v7  ;;  %v4400_v43 = vsub.f32 %v41_v34, %v4382_v37 }
  0x14   :  { %3208 = vmatpush3.bf16.msra.mxu0 %v4041_v16  ;;  %3512 = vmatpush3.bf16.msra.mxu1 %v4040_v15  ;;  %v44_v15 = vld [vmem:[%s5219_s7 + $0x58] sm:$0xff]  ;;  %v4396_v42 = vand.u32 4294901760, %v4380_v36  ;;  %v4443_v60 = vsub.f32 %v39_v46, %v4425_v52 }
  0x15   :  { %3209 = vmatprep.subr.bf16.mxu0 %v4042_v18  ;;  %3513 = vmatprep.subr.bf16.mxu1 %v4043_v19  ;;  %v574_v10 = vsub.f32 %v4288_v3, %v4296_v6  ;;  %v581_v17 = vsub.f32 %v4299_v7, %v4309_v11  ;;  %v4324_v18 = vand.u32 4294901760, %v4312_v12  ;;  %v4331_v21 = vand.u32 4294901760, %v44_v15 }
  0x16   :  { %5300 = vst [vmem:[#allocation14_spill] sm:$0xff] %v4396_v42  ;;  %v616_v49 = vsub.f32 %v4380_v36, %v4396_v42  ;;  %v4417_v50 = vand.u32 4294901760, %v4400_v43 }
  0x17   :  { %v4319_v16 = vand.u32 4294901760, %v574_v10  ;;  %v4337_v23 = vand.u32 4294901760, %v581_v17  ;;  %v4349_v27 = vsub.f32 %v44_v15, %v4331_v21  ;;  %v36_v10 = vld [vmem:[%s5219_s7 + $0x18] sm:$0xff] }
  0x18   :  { %3210 = vmatpush3.bf16.msra.mxu0 %v4044_v20  ;;  %3514 = vmatpush3.bf16.msra.mxu1 %v4043_v19  ;;  %v5251_v19 = vmov 0.0   ;;  %v4328_v20 = vsub.f32 %v45_v9, %v4314_v14  ;;  %5303 = vst [vmem:[#allocation17_spill] sm:$0xff] %v4417_v50  ;;  %v4462_v9 = vand.u32 4294901760, %v4443_v60 }
  0x19   :  { %3211 = vmatprep.subr.bf16.mxu0 %v4045_v22  ;;  %3515 = vmatprep.subr.bf16.mxu1 %v4046_v24  ;;  %5293 = vst [vmem:[#allocation7_spill] sm:$0xff] %v4319_v16  ;;  %v43_v22 = vld [vmem:[%s5219_s7 + $0x50] sm:$0xff]  ;;  %5294 = vst [vmem:[#allocation8_spill] sm:$0xff] %v4337_v23 }
  0x1a   :  { %v4346_v26 = vand.u32 4294901760, %v4328_v20  ;;  %5307 = vst [vmem:[#allocation21_spill] sm:$0xff] %v4462_v9  ;;  %v637_v28 = vsub.f32 %v4443_v60, %v4462_v9 }
  0x1c   :  { %3212 = vmatpush3.bf16.msra.mxu0 %v4047_v25  ;;  %3516 = vmatpush3.bf16.msra.mxu1 %v4046_v24  ;;  %v588_v24 = vsub.f32 %v4312_v12, %v4324_v18  ;;  %v4342_v25 = vand.u32 4294901760, %v43_v22  ;;  %5295 = vst [vmem:[#allocation9_spill] sm:$0xff] %v4346_v26  ;;  %v4500_v46 = vand.u32 4294901760, %v637_v28  ;;  %v33_v28 = vld [vmem:[%s5219_s7] sm:$0xff] }
  0x1d   :  { %3213 = vmatprep.subr.bf16.mxu0 %v4048_v32  ;;  %3517 = vmatprep.subr.bf16.mxu1 %v4049_v33  ;;  %v595_v32 = vsub.f32 %v4328_v20, %v4346_v26 }
  0x1e   :  { %v4356_v29 = vand.u32 4294901760, %v588_v24  ;;  %v4360_v30 = vsub.f32 %v43_v22, %v4342_v25  ;;  %v4476_v22 = vsub.f32 %v37_v61, %v4458_v5  ;;  %v4478_v24 = vand.u32 4294901760, %v36_v10  ;;  %5311 = vst [vmem:[#allocation25_spill] sm:$0xff] %v4500_v46 }
  0x1f   :  { %v4385_v38 = vand.u32 4294901760, %v595_v32  ;;  %v35_v32 = vld [vmem:[%s5219_s7 + $0x10] sm:$0xff] }
  0x20   :  { %3214 = vmatpush3.bf16.msra.mxu0 %v4050_v44  ;;  %3518 = vmatpush3.bf16.msra.mxu1 %v4049_v33  ;;  %5296 = vst [vmem:[#allocation10_spill] sm:$0xff] %v4356_v29  ;;  %v4368_v33 = vand.u32 4294901760, %v4349_v27  ;;  %v4376_v35 = vand.u32 4294901760, %v4360_v30  ;;  %v4402_v44 = vand.u32 4294901760, %v40_v40 }
  0x21   :  { %3558 = vmatprep.subr.mxu1 %v5251_v19  ;;  %3523 = vmatprep.subr.mxu0 %v5251_v19  ;;  %5299 = vst [vmem:[#allocation13_spill] sm:$0xff] %v4385_v38 }
  0x22   :  { %5297 = vst [vmem:[#allocation11_spill] sm:$0xff] %v4368_v33  ;;  %5298 = vst [vmem:[#allocation12_spill] sm:$0xff] %v4376_v35  ;;  %v602_v39 = vsub.f32 %v4349_v27, %v4368_v33  ;;  %v609_v41 = vsub.f32 %v4360_v30, %v4376_v35  ;;  %v4421_v51 = vsub.f32 %v40_v40, %v4402_v44 }
  0x23   :  { %3153 = vmatmul.mubr.msk.bf16.vlgmr.msra.gmra.mxu0 %vm4255_vm7, %v3152_v54  ;;  %3520 = vmatmul.mubr.msk.bf16.vlgmr.msra.gmra.mxu1 %vm4260_vm8, %v3161_v55  ;;  %v38_v54 = vld [vmem:[%s5219_s7 + $0x28] sm:$0xff]  ;;  %v4431_v55 = vand.u32 4294901760, %v616_v49  ;;  %v4495_v40 = vsub.f32 %v36_v10, %v4478_v24 }
  0x24   :  { %395 = vmatprep.mubr.bf16.mxu0 %v161_v57  ;;  %3559 = vmatpush3.msra.mxu1 %v4319_v16  ;;  %v4405_v45 = vand.u32 4294901760, %v602_v39  ;;  %v4412_v48 = vand.u32 4294901760, %v609_v41  ;;  %v623_v57 = vsub.f32 %v4400_v43, %v4417_v50  ;;  %v4436_v58 = vand.u32 4294901760, %v4421_v51  ;;  %v34_v49 = vld [vmem:[%s5219_s7 + $0x8] sm:$0xff] }
  0x25   :  { %3524 = vmatpush3.msra.mxu0 %v4282_v1  ;;  %3560 = vmatprep.subr.mxu1 %v5251_v19  ;;  %5304 = vst [vmem:[#allocation18_spill] sm:$0xff] %v4431_v55  ;;  %v4439_v59 = vand.u32 4294901760, %v38_v54  ;;  %v4491_v39 = vand.u32 4294901760, %v4476_v22  ;;  %v4497_v41 = vand.u32 4294901760, %v35_v32  ;;  %v4512_v61 = vand.u32 4294901760, %v4495_v40 }
  0x26   :  { %3525 = vmatprep.subr.mxu0 %v5251_v19  ;;  %3561 = vmatpush3.msra.mxu1 %v4337_v23  ;;  %5301 = vst [vmem:[#allocation15_spill] sm:$0xff] %v4405_v45  ;;  %5302 = vst [vmem:[#allocation16_spill] sm:$0xff] %v4412_v48  ;;  %v630_v0 = vsub.f32 %v4421_v51, %v4436_v58  ;;  %v4520_v10 = vand.u32 4294901760, %v34_v49 }
  0x27   :  { %3526 = vmatpush3.msra.mxu0 %v4290_v4  ;;  %3562 = vmatprep.subr.mxu1 %v5251_v19  ;;  %5305 = vst [vmem:[#allocation19_spill] sm:$0xff] %v4436_v58  ;;  %v4456_v2 = vsub.f32 %v38_v54, %v4439_v59  ;;  %5310 = vst [vmem:[#allocation24_spill] sm:$0xff] %v4491_v39 }
  0x28   :  { %3527 = vmatprep.subr.mxu0 %v5251_v19  ;;  %3563 = vmatpush3.msra.mxu1 %v4356_v29  ;;  %v4469_v15 = vand.u32 4294901760, %v630_v0  ;;  %5313 = vst [vmem:[#allocation27_spill] sm:$0xff] %v4512_v61  ;;  %v4516_v0 = vsub.f32 %v35_v32, %v4497_v41 }
  0x29   :  { %3528 = vmatpush3.msra.mxu0 %v4301_v8  ;;  %3564 = vmatprep.subr.mxu1 %v5251_v19  ;;  %v4472_v17 = vand.u32 4294901760, %v4456_v2 }
  0x2a   :  { %3529 = vmatprep.subr.mxu0 %v5251_v19  ;;  %3565 = vmatpush3.msra.mxu1 %v4385_v38  ;;  %5308 = vst [vmem:[#allocation22_spill] sm:$0xff] %v4469_v15  ;;  %v4531_v32 = vand.u32 4294901760, %v4516_v0 }
  0x2b   :  { %3156 = vmatmul.mubr.msk.bf16.gmra.mxu0 %vm4273_vm10, %v3155_v62  ;;  %3566 = vmatprep.subr.mxu1 %v5251_v19  ;;  %v4450_v62 = vand.u32 4294901760, %v623_v57  ;;  %5309 = vst [vmem:[#allocation23_spill] sm:$0xff] %v4472_v17  ;;  %v644_v34 = vsub.f32 %v4456_v2, %v4472_v17  ;;  %v651_v57 = vsub.f32 %v4476_v22, %v4491_v39 }
  0x2c   :  { %3530 = vmatpush3.msra.mxu0 %v4314_v14  ;;  %3567 = vmatpush3.msra.mxu1 %v4405_v45  ;;  %5315 = vst [vmem:[#allocation29_spill] sm:$0xff] %v4531_v32 }
  0x2d   :  { %3531 = vmatprep.subr.mxu0 %v5251_v19  ;;  %3568 = vmatprep.subr.mxu1 %v5251_v19  ;;  %5306 = vst [vmem:[#allocation20_spill] sm:$0xff] %v4450_v62  ;;  %v4507_v54 = vand.u32 4294901760, %v644_v34  ;;  %v4526_v34 = vand.u32 4294901760, %v651_v57 }
  0x2e   :  { %3532 = vmatpush3.msra.mxu0 %v4331_v21  ;;  %3569 = vmatpush3.msra.mxu1 %v4412_v48 }
  0x2f   :  { %3533 = vmatprep.subr.mxu0 %v5251_v19  ;;  %3570 = vmatprep.subr.mxu1 %v5251_v19  ;;  %5312 = vst [vmem:[#allocation26_spill] sm:$0xff] %v4507_v54  ;;  %5314 = vst [vmem:[#allocation28_spill] sm:$0xff] %v4526_v34 }
  0x30   :  { %3534 = vmatpush3.msra.mxu0 %v4342_v25  ;;  %3571 = vmatpush3.msra.mxu1 %v4431_v55  ;;  %v665_v55 = vsub.f32 %v4516_v0, %v4531_v32 }
  0x31   :  { %3535 = vmatprep.subr.mxu0 %v5251_v19  ;;  %3572 = vmatprep.subr.mxu1 %v5251_v19 }
  0x32   :  { %3536 = vmatpush3.msra.mxu0 %v4362_v31  ;;  %3573 = vmatpush3.msra.mxu1 %v4450_v62  ;;  %v4538_v62 = vsub.f32 %v34_v49, %v4520_v10  ;;  %v4556_v49 = vand.u32 4294901760, %v665_v55 }
  0x33   :  { %3537 = vmatprep.subr.mxu0 %v5251_v19  ;;  %3574 = vmatprep.subr.mxu1 %v5251_v19 }
  0x34   :  { %3538 = vmatpush3.msra.mxu0 %v4382_v37  ;;  %3575 = vmatpush3.msra.mxu1 %v4469_v15  ;;  %v658_v15 = vsub.f32 %v4495_v40, %v4512_v61  ;;  %5318 = vst [vmem:[#allocation32_spill] sm:$0xff] %v4556_v49 }
  0x35   :  { %3539 = vmatprep.subr.mxu0 %v5251_v19  ;;  %3576 = vmatprep.subr.mxu1 %v5251_v19 }
  0x36   :  { %3540 = vmatpush3.msra.mxu0 %v4402_v44  ;;  %3577 = vmatpush3.msra.mxu1 %v4500_v46  ;;  %v4534_v46 = vand.u32 4294901760, %v33_v28  ;;  %v4542_v57 = vand.u32 4294901760, %v658_v15 }
  0x37   :  { %3541 = vmatprep.subr.mxu0 %v5251_v19  ;;  %3578 = vmatprep.subr.mxu1 %v5251_v19 }
  0x38   :  { %3542 = vmatpush3.msra.mxu0 %v4425_v52  ;;  %3579 = vmatpush3.msra.mxu1 %v4507_v54  ;;  %5316 = vst [vmem:[#allocation30_spill] sm:$0xff] %v4542_v57  ;;  %v4548_v48 = vsub.f32 %v33_v28, %v4534_v46  ;;  %v4552_v54 = vand.u32 4294901760, %v4538_v62 }
  0x39   :  { %3543 = vmatprep.subr.mxu0 %v5251_v19  ;;  %3580 = vmatprep.subr.mxu1 %v5251_v19 }
  0x3a   :  { %3544 = vmatpush3.msra.mxu0 %v4439_v59  ;;  %3581 = vmatpush3.msra.mxu1 %v4526_v34  ;;  %5317 = vst [vmem:[#allocation31_spill] sm:$0xff] %v4552_v54  ;;  %v4559_v15 = vand.u32 4294901760, %v4548_v48  ;;  %v672_v28 = vsub.f32 %v4538_v62, %v4552_v54 }
  0x3b   :  { %3545 = vmatprep.subr.mxu0 %v5251_v19  ;;  %3582 = vmatprep.subr.mxu1 %v5251_v19 }
  0x3c   :  { %3546 = vmatpush3.msra.mxu0 %v4458_v5  ;;  %5319 = vst [vmem:[#allocation33_spill] sm:$0xff] %v4559_v15  ;;  %3590 = vmatprep.mubr.msk.f32.mxu1 %vm4085_vm11, %v5251_v19  ;;  %v679_v55 = vsub.f32 %v4548_v48, %v4559_v15  ;;  %v4572_v34 = vand.u32 4294901760, %v672_v28 }
  0x3d   :  { %3547 = vmatprep.subr.mxu0 %v5251_v19  ;;  %3583 = vmatpush3.msra.mxu1 %v4542_v57 }
  0x3e   :  { %3548 = vmatpush3.msra.mxu0 %v4478_v24  ;;  %3584 = vmatprep.subr.mxu1 %v5251_v19  ;;  %5320 = vst [vmem:[#allocation34_spill] sm:$0xff] %v4572_v34  ;;  %v4576_v57 = vand.u32 4294901760, %v679_v55 }
  0x3f   :  { %3549 = vmatprep.subr.mxu0 %v5251_v19  ;;  %3585 = vmatpush3.msra.mxu1 %v4556_v49 }
  0x40   :  { %3550 = vmatpush3.msra.mxu0 %v4497_v41  ;;  %3586 = vmatprep.subr.mxu1 %v5251_v19  ;;  %5321 = vst [vmem:[#allocation35_spill] sm:$0xff] %v4576_v57 }
  0x41   :  { %3551 = vmatprep.subr.mxu0 %v5251_v19  ;;  %3587 = vmatpush3.msra.mxu1 %v4572_v34 }
  0x42   :  { %3552 = vmatpush3.msra.mxu0 %v4520_v10  ;;  %3588 = vmatprep.subr.mxu1 %v5251_v19 }
  0x43   :  { %3553 = vmatprep.subr.mxu0 %v5251_v19  ;;  %3589 = vmatpush3.msra.mxu1 %v4576_v57 }
  0x44   :  { %3554 = vmatpush3.msra.mxu0 %v4534_v46  ;;  %3628 = vmatprep.subr.mxu1 %v5251_v19 }
  0x45   :  { %3555 = vmatprep.mubr.msk.f32.mxu0 %vm4085_vm11, %v5251_v19  ;;  %3593 = vmatprep.subr.mxu0 %v5251_v19 }
  0xe3   :  { %v3215_v28 = vpop.f32.mrf.mxu0  ;;  %v3521_v55 = vpop.f32.mrf.mxu1 }
  0xe5   :  { %v3216_v34 = vpop.f32.mrf.mxu0  ;;  %v438_v49 = vpop.f32.mrf.mxu1 }
  0xe6   :  { %v3217_v29 = vadd.f32 %v3216_v34, %v3215_v28 }
  0xe7   :  { %v3218_v45 = vpop.f32.mrf.mxu0  ;;  %v3522_v38 = vpop.f32.mrf.mxu1 }
  0xe8   :  { %v4591_v53 = vadd.f32 %v3217_v29, %v438_v49 }
  0xe9   :  { %v3219_v63 = vpop.f32.mrf.mxu0  ;;  %v441_v16 = vpop.f32.mrf.mxu1 }
  0xea   :  { %v3220_v23 = vadd.f32 %v3219_v63, %v3218_v45  ;;  %5323 = vst [vmem:[#allocation37_spill] sm:$0xff] %v4591_v53  ;;  %v464_v61 = vmul.f32 %v4591_v53, %v4591_v53 }
  0xeb   :  { %v3221_v57 = vpop.f32.mrf.mxu0 }
  0xec   :  { %v4589_v56 = vadd.f32 %v3220_v23, %v441_v16 }
  0xed   :  { %v3222_v47 = vpop.f32.mrf.mxu0 }
  0xee   :  { %5322 = vst [vmem:[#allocation36_spill] sm:$0xff] %v4589_v56  ;;  %v3223_v13 = vadd.f32 %v3222_v47, %v3221_v57  ;;  %v465_v19 = vmul.f32 %v4589_v56, %v4589_v56  ;;  %v455_v63 = vadd.f32 %v4589_v56, %v4591_v53 }
  0xef   :  { %v3224_v15 = vpop.f32.mrf.mxu0 }
  0xf0   :  { %v4595_v54 = vadd.f32 %v3521_v55, %v3223_v13  ;;  %v468_v29 = vadd.f32 %v465_v19, %v464_v61 }
  0xf1   :  { %v3225_v32 = vpop.f32.mrf.mxu0 }
  0xf2   :  { %v466_v16 = vmul.f32 %v4595_v54, %v4595_v54  ;;  %v3226_v23 = vadd.f32 %v3225_v32, %v3224_v15  ;;  %v456_v47 = vadd.f32 %v455_v63, %v4595_v54 }
  0xf4   :  { %v4604_v45 = vadd.f32 %v3522_v38, %v3226_v23  ;;  %v469_v34 = vadd.f32 %v468_v29, %v466_v16  ;;  %v5326_v29 = vld [vmem:[#allocation23_spill] sm:$0xff] }
  0xf6   :  { %v457_v13 = vadd.f32 %v456_v47, %v4604_v45  ;;  %v467_v57 = vmul.f32 %v4604_v45, %v4604_v45  ;;  %v5327_v47 = vld [vmem:[#allocation24_spill] sm:$0xff] }
  0xf8   :  { %v458_v49 = vrot.slane %v457_v13, 4  ;;  %v470_v28 = vadd.f32 %v469_v34, %v467_v57  ;;  %v5328_v34 = vld [vmem:[#allocation27_spill] sm:$0xff] }
  0xf9   :  { %v5330_v57 = vld [vmem:[#allocation31_spill] sm:$0xff] }
  0xfa   :  { %v459_v55 = vadd.f32 %v458_v49, %v457_v13  ;;  %v471_v39 = vrot.slane %v470_v28, 4  ;;  %v5329_v13 = vld [vmem:[#allocation29_spill] sm:$0xff] }
  0xfb   :  { %v5331_v49 = vld [vmem:[#allocation33_spill] sm:$0xff] }
  0xfc   :  { %v460_v56 = vrot.slane %v459_v55, 2  ;;  %v472_v53 = vadd.f32 %v471_v39, %v470_v28  ;;  %v5324_v39 = vmov 0.0   ;;  %v49_v28 = vld [vmem:[%s5220_s8] sm:$0xff] }
  0xfe   :  { %v461_v17 = vadd.f32 %v460_v56, %v459_v55  ;;  %v473_v9 = vrot.slane %v472_v53, 2  ;;  %v4764_v55 = vand.u32 4294901760, %v49_v28 }
 0x100   :  { %v462_v32 = vrot.slane %v461_v17, 1  ;;  %v474_v19 = vadd.f32 %v473_v9, %v472_v53 }
 0x102   :  { %v475_v61 = vrot.slane %v474_v19, 1  ;;  %v463_v38 = vadd.f32 %v462_v32, %v461_v17  ;;  %v5325_v17 = vld [vmem:[#allocation21_spill] sm:$0xff]  ;;  %v4767_v32 = vsub.f32 %v49_v28, %v4764_v55 }
 0x104   :  { %v476_v15 = vadd.f32 %v475_v61, %v474_v19  ;;  %5332 = vst [vmem:[#allocation38_spill] sm:$0xff] %v4767_v32  ;;  %v4772_v19 = vand.u32 4294901760, %v4767_v32 }
 0x106   :  { %v478_v63 = vsel %vm477_vm12, %v463_v38, %v476_v15  ;;  %5333 = vst [vmem:[#allocation39_spill] sm:$0xff] %v4772_v19  ;;  %v1269_v61 = vsub.f32 %v4767_v32, %v4772_v19 }
 0x107   :  { %v4610_v16 = vand.u32 4294901760, %v478_v63 }
 0x108   :  { %v4776_v38 = vand.u32 4294901760, %v1269_v61 }
 0x109   :  { %v4613_v23 = vsub.f32 %v478_v63, %v4610_v16  ;;  %3591 = vmatmul.mubr.f32.vlgmr.msra.gmra.mxu1 %v4610_v16 }
 0x10a   :  { %3629 = vmatpush3.msra.mxu1 %v4282_v1  ;;  %3660 = vmatprep.mubr.msk.f32.mxu1 %vm4085_vm11, %v5324_v39  ;;  %5334 = vst [vmem:[#allocation40_spill] sm:$0xff] %v4776_v38 }
 0x10b   :  { %v562_v53 = vand.u32 4294901760, %v4613_v23  ;;  %3630 = vmatprep.subr.mxu1 %v5324_v39 }
 0x10c   :  { %3631 = vmatpush3.msra.mxu1 %v4290_v4 }
 0x10d   :  { %3632 = vmatprep.subr.mxu1 %v5324_v39  ;;  %v563_v56 = vsub.f32 %v4613_v23, %v562_v53 }
 0x10e   :  { %3633 = vmatpush3.msra.mxu1 %v4301_v8 }
 0x10f   :  { %3634 = vmatprep.subr.mxu1 %v5324_v39  ;;  %v564_v9 = vand.u32 4294901760, %v563_v56 }
 0x110   :  { %3635 = vmatpush3.msra.mxu1 %v4314_v14 }
 0x111   :  { %3636 = vmatprep.subr.mxu1 %v5324_v39  ;;  %3556 = vmatmul.mubr.f32.vlgmr.msra.gmra.mxu0 %v564_v9 }
 0x112   :  { %3594 = vmatpush3.msra.mxu0 %v4288_v3  ;;  %3637 = vmatpush3.msra.mxu1 %v4331_v21 }
 0x113   :  { %3595 = vmatprep.subr.mxu0 %v5324_v39  ;;  %3638 = vmatprep.subr.mxu1 %v5324_v39 }
 0x114   :  { %3596 = vmatpush3.msra.mxu0 %v4299_v7  ;;  %3639 = vmatpush3.msra.mxu1 %v4342_v25 }
 0x115   :  { %3597 = vmatprep.subr.mxu0 %v5324_v39  ;;  %3640 = vmatprep.subr.mxu1 %v5324_v39 }
 0x116   :  { %3598 = vmatpush3.msra.mxu0 %v4312_v12  ;;  %3641 = vmatpush3.msra.mxu1 %v4362_v31 }
 0x117   :  { %3599 = vmatprep.subr.mxu0 %v5324_v39  ;;  %3642 = vmatprep.subr.mxu1 %v5324_v39 }
 0x118   :  { %3600 = vmatpush3.msra.mxu0 %v4328_v20  ;;  %3643 = vmatpush3.msra.mxu1 %v4382_v37 }
 0x119   :  { %3601 = vmatprep.subr.mxu0 %v5324_v39  ;;  %3644 = vmatprep.subr.mxu1 %v5324_v39 }
 0x11a   :  { %3602 = vmatpush3.msra.mxu0 %v4349_v27  ;;  %3645 = vmatpush3.msra.mxu1 %v4402_v44 }
 0x11b   :  { %3603 = vmatprep.subr.mxu0 %v5324_v39  ;;  %3646 = vmatprep.subr.mxu1 %v5324_v39 }
 0x11c   :  { %3604 = vmatpush3.msra.mxu0 %v4360_v30  ;;  %3647 = vmatpush3.msra.mxu1 %v4425_v52 }
 0x11d   :  { %3605 = vmatprep.subr.mxu0 %v5324_v39  ;;  %3648 = vmatprep.subr.mxu1 %v5324_v39 }
 0x11e   :  { %3606 = vmatpush3.msra.mxu0 %v4380_v36  ;;  %3649 = vmatpush3.msra.mxu1 %v4439_v59 }
 0x11f   :  { %3607 = vmatprep.subr.mxu0 %v5324_v39  ;;  %3650 = vmatprep.subr.mxu1 %v5324_v39 }
 0x120   :  { %3608 = vmatpush3.msra.mxu0 %v4400_v43  ;;  %3651 = vmatpush3.msra.mxu1 %v4458_v5 }
 0x121   :  { %3609 = vmatprep.subr.mxu0 %v5324_v39  ;;  %3652 = vmatprep.subr.mxu1 %v5324_v39 }
 0x122   :  { %3610 = vmatpush3.msra.mxu0 %v4421_v51  ;;  %3653 = vmatpush3.msra.mxu1 %v4478_v24 }
 0x123   :  { %3611 = vmatprep.subr.mxu0 %v5324_v39  ;;  %3654 = vmatprep.subr.mxu1 %v5324_v39 }
 0x124   :  { %3612 = vmatpush3.msra.mxu0 %v4443_v60  ;;  %3655 = vmatpush3.msra.mxu1 %v4497_v41 }
 0x125   :  { %3613 = vmatprep.subr.mxu0 %v5324_v39  ;;  %3656 = vmatprep.subr.mxu1 %v5324_v39 }
 0x126   :  { %3614 = vmatpush3.msra.mxu0 %v4456_v2  ;;  %3657 = vmatpush3.msra.mxu1 %v4520_v10 }
 0x127   :  { %3615 = vmatprep.subr.mxu0 %v5324_v39  ;;  %3658 = vmatprep.subr.mxu1 %v5324_v39 }
 0x128   :  { %3616 = vmatpush3.msra.mxu0 %v4476_v22  ;;  %3659 = vmatpush3.msra.mxu1 %v4534_v46 }
 0x129   :  { %3617 = vmatprep.subr.mxu0 %v5324_v39  ;;  %3661 = vmatmul.mubr.f32.vlgmr.msra.gmra.mxu1 %v562_v53 }
 0x12a   :  { %3698 = vmatprep.subr.mxu1 %v5324_v39  ;;  %3618 = vmatpush3.msra.mxu0 %v4495_v40 }
 0x12b   :  { %3699 = vmatpush3.msra.mxu1 %v4282_v1  ;;  %3619 = vmatprep.subr.mxu0 %v5324_v39 }
 0x12c   :  { %3700 = vmatprep.subr.mxu1 %v5324_v39  ;;  %3620 = vmatpush3.msra.mxu0 %v4516_v0 }
 0x12d   :  { %3701 = vmatpush3.msra.mxu1 %v4290_v4  ;;  %3621 = vmatprep.subr.mxu0 %v5324_v39 }
 0x12e   :  { %3702 = vmatprep.subr.mxu1 %v5324_v39  ;;  %3622 = vmatpush3.msra.mxu0 %v4538_v62 }
 0x12f   :  { %3703 = vmatpush3.msra.mxu1 %v4301_v8  ;;  %3623 = vmatprep.subr.mxu0 %v5324_v39 }
 0x130   :  { %3704 = vmatprep.subr.mxu1 %v5324_v39  ;;  %3624 = vmatpush3.msra.mxu0 %v4548_v48 }
 0x131   :  { %3625 = vmatprep.mubr.msk.f32.mxu0 %vm4085_vm11, %v5324_v39  ;;  %3705 = vmatpush3.msra.mxu1 %v4314_v14 }
 0x132   :  { %3626 = vmatmul.mubr.f32.vlgmr.msra.gmra.mxu0 %v4613_v23  ;;  %3663 = vmatprep.subr.mxu0 %v5324_v39 }
 0x133   :  { %3706 = vmatprep.subr.mxu1 %v5324_v39  ;;  %3664 = vmatpush3.msra.mxu0 %v4296_v6 }
 0x134   :  { %3707 = vmatpush3.msra.mxu1 %v4331_v21  ;;  %3665 = vmatprep.subr.mxu0 %v5324_v39 }
 0x135   :  { %3708 = vmatprep.subr.mxu1 %v5324_v39  ;;  %3666 = vmatpush3.msra.mxu0 %v4309_v11 }
 0x136   :  { %3709 = vmatpush3.msra.mxu1 %v4342_v25  ;;  %3667 = vmatprep.subr.mxu0 %v5324_v39 }
 0x137   :  { %3710 = vmatprep.subr.mxu1 %v5324_v39  ;;  %3668 = vmatpush3.msra.mxu0 %v4324_v18 }
 0x138   :  { %3711 = vmatpush3.msra.mxu1 %v4362_v31  ;;  %3669 = vmatprep.subr.mxu0 %v5324_v39 }
 0x139   :  { %3712 = vmatprep.subr.mxu1 %v5324_v39  ;;  %3670 = vmatpush3.msra.mxu0 %v4346_v26  ;;  %v5335_v26 = vld [vmem:[#allocation2_spill] sm:$0xff] }
 0x13a   :  { %3713 = vmatpush3.msra.mxu1 %v4382_v37  ;;  %3671 = vmatprep.subr.mxu0 %v5324_v39 }
 0x13b   :  { %3714 = vmatprep.subr.mxu1 %v5324_v39  ;;  %3672 = vmatpush3.msra.mxu0 %v4368_v33 }
 0x13c   :  { %3715 = vmatpush3.msra.mxu1 %v4402_v44  ;;  %3673 = vmatprep.subr.mxu0 %v5324_v39 }
 0x13d   :  { %3716 = vmatprep.subr.mxu1 %v5324_v39  ;;  %3674 = vmatpush3.msra.mxu0 %v4376_v35 }
 0x13e   :  { %3717 = vmatpush3.msra.mxu1 %v4425_v52  ;;  %3675 = vmatprep.subr.mxu0 %v5324_v39 }
 0x13f   :  { %3718 = vmatprep.subr.mxu1 %v5324_v39  ;;  %3676 = vmatpush3.msra.mxu0 %v4396_v42 }
 0x140   :  { %3719 = vmatpush3.msra.mxu1 %v4439_v59  ;;  %3677 = vmatprep.subr.mxu0 %v5324_v39 }
 0x141   :  { %3720 = vmatprep.subr.mxu1 %v5324_v39  ;;  %3678 = vmatpush3.msra.mxu0 %v4417_v50 }
 0x142   :  { %3721 = vmatpush3.msra.mxu1 %v4458_v5  ;;  %3679 = vmatprep.subr.mxu0 %v5324_v39 }
 0x143   :  { %3722 = vmatprep.subr.mxu1 %v5324_v39  ;;  %3680 = vmatpush3.msra.mxu0 %v4436_v58 }
 0x144   :  { %3723 = vmatpush3.msra.mxu1 %v4478_v24  ;;  %3681 = vmatprep.subr.mxu0 %v5324_v39 }
 0x145   :  { %3724 = vmatprep.subr.mxu1 %v5324_v39  ;;  %3682 = vmatpush3.msra.mxu0 %v5325_v17 }
 0x146   :  { %3725 = vmatpush3.msra.mxu1 %v4497_v41  ;;  %3683 = vmatprep.subr.mxu0 %v5324_v39 }
 0x147   :  { %3726 = vmatprep.subr.mxu1 %v5324_v39  ;;  %3684 = vmatpush3.msra.mxu0 %v5326_v29 }
 0x148   :  { %3727 = vmatpush3.msra.mxu1 %v4520_v10  ;;  %3685 = vmatprep.subr.mxu0 %v5324_v39 }
 0x149   :  { %3728 = vmatprep.subr.mxu1 %v5324_v39  ;;  %3686 = vmatpush3.msra.mxu0 %v5327_v47 }
 0x14a   :  { %3729 = vmatpush3.msra.mxu1 %v4534_v46  ;;  %3730 = vmatprep.mubr.msk.f32.mxu1 %vm4085_vm11, %v5324_v39 }
 0x14b   :  { %3687 = vmatprep.subr.mxu0 %v5324_v39  ;;  %3731 = vmatmul.mubr.f32.vlgmr.msra.gmra.mxu1 %v4610_v16 }
 0x14c   :  { %3688 = vmatpush3.msra.mxu0 %v5328_v34  ;;  %3695 = vmatprep.mubr.msk.f32.mxu0 %vm4085_vm11, %v5324_v39 }
 0x14d   :  { %3689 = vmatprep.subr.mxu0 %v5324_v39  ;;  %3738 = vmatprep.subr.mxu1 %v5324_v39 }
 0x14e   :  { %3690 = vmatpush3.msra.mxu0 %v5329_v13  ;;  %3740 = vmatprep.mubr.msk.f32.mxu1 %vm4085_vm11, %v5324_v39 }
 0x14f   :  { %3691 = vmatprep.subr.mxu0 %v5324_v39  ;;  %3739 = vmatpush3.msra.mxu1 %v4776_v38 }
 0x150   :  { %3692 = vmatpush3.msra.mxu0 %v5330_v57  ;;  %3748 = vmatprep.subr.mxu1 %v5324_v39 }
 0x151   :  { %3693 = vmatprep.subr.mxu0 %v5324_v39 }
 0x152   :  { %3694 = vmatpush3.msra.mxu0 %v5331_v49 }
 0x153   :  { %3696 = vmatmul.mubr.f32.vlgmr.msra.gmra.mxu0 %v4610_v16  ;;  %3733 = vmatprep.subr.mxu0 %v5324_v39 }
 0x154   :  { %3735 = vmatprep.mubr.msk.f32.mxu0 %vm4085_vm11, %v5324_v39  ;;  %3734 = vmatpush3.msra.mxu0 %v4764_v55 }
 0x155   :  { %3743 = vmatprep.subr.mxu0 %v5324_v39 }
 0x1c9   :  { %v717_v15 = vpop.f32.mrf.mxu1 }
 0x1cb   :  { %v3592_v63 = vpop.f32.mrf.mxu1 }
 0x1d1   :  { %v566_v16 = vpop.f32.mrf.mxu0 }
 0x1d2   :  { %v718_v57 = vadd.f32 %v717_v15, %v566_v16 }
 0x1d3   :  { %v3557_v23 = vpop.f32.mrf.mxu0 }
 0x1d4   :  { %v4086_v23 = vmov 1966171168  }
 0x1d5   :  { %v1130_v33 = vunpack.c.l.s4 %v4086_v23  ;;  %v4052_v23 = vld [vmem:[%s5223_s4 + $0x38] sm:$0xff]  }
 0x1e9   :  { %v910_v53 = vpop.f32.mrf.mxu1 }
 0x1eb   :  { %v3662_v56 = vpop.f32.mrf.mxu1 }
 0x1ec   :  { %v1131_v56 = vunpack.c.0.s8 %v1130_v33  ;;  %v4792_v33 = vsub.s32 0, %v5335_v26 }
 0x1f2   :  { %v821_v9 = vpop.f32.mrf.mxu0 }
 0x1f3   :  { %v822_v34 = vadd.f32 %v821_v9, %v718_v57 }
 0x1f4   :  { %v3627_v28 = vpop.f32.mrf.mxu0 }
 0x1f5   :  { %v911_v47 = vadd.f32 %v910_v53, %v822_v34  ;;  %v4781_v28 = vsub.s32 %v1131_v56, %v5335_v26  ;;  %v4053_v56 = vld [vmem:[%s5223_s4 + $0xb8] sm:$0xff]  }
 0x20b   :  { %v1116_v49 = vpop.f32.mrf.mxu1 }
 0x20d   :  { %v3732_v13 = vpop.f32.mrf.mxu1 }
 0x213   :  { %v1029_v29 = vpop.f32.mrf.mxu0 }
 0x214   :  { %v1030_v61 = vadd.f32 %v1029_v29, %v911_v47 }
 0x215   :  { %v3697_v17 = vpop.f32.mrf.mxu0 }
 0x216   :  { %v1117_v58 = vadd.f32 %v1116_v49, %v1030_v61  ;;  %v453_v17 = vld [vmem:[%s5221_s2] sm:$0x1] }
 0x218   :  { %v1120_v38 = vmul.f32 0.001953125, %v1117_v58 }
 0x21a   :  { %v1121_v50 = vmul.f32 %v1120_v38, %v1120_v38 }
 0x21c   :  { %v1123_v42 = vrot.slane %v1121_v50, 7 }
 0x21e   :  { %v1125_v35 = vsub.f32 %v1120_v38, %v1123_v42 }
 0x220   :  { %v1126_v63 = vadd.f32 1e-05, %v1125_v35  ;;  %v454_v35 = vld [vmem:[%s5222_s3] sm:$0x1] }
 0x222   :  { %4075 = vrsqrt.f32 %v1126_v63  ;;  %v4051_v63 = vld [vmem:[%s5223_s4 + $0x78] sm:$0xff]  }
 0x22f   :  { %v4076_v15 = vpop.eup %4075 }
 0x230   :  { %v1135_v13 = vrot.slane %v4076_v15, %v4781_v28  ;;  %v4054_v15 = vld [vmem:[%s5223_s4 + $0x70] sm:$0xff]  }
 0x232   :  { %v1136_v34 = vcombine.high %v1135_v13, %v1135_v13  ;;  %v4055_v13 = vld [vmem:[%s5223_s4 + $0x30] sm:$0xff]  }
 0x234   :  { %v1143_v58 = vrot.slane %v1136_v34, %v4781_v28  ;;  %v4056_v34 = vld [vmem:[%s5223_s4 + $0xb0] sm:$0xff]  }
 0x236   :  { %v1145_v50 = vmul.f32 %v1143_v58, %v453_v17  ;;  %v4057_v17 = vld [vmem:[%s5223_s4 + $0x68] sm:$0xff]  }
 0x237   :  { %v4058_v58 = vld [vmem:[%s5223_s4 + $0x28] sm:$0xff]  }
 0x238   :  { %v1146_v42 = vmul.f32 %v1145_v50, %v1120_v38 }
 0x23a   :  { %v1147_v29 = vsub.f32 %v454_v35, %v1146_v42  ;;  %v4060_v35 = vld [vmem:[%s5223_s4 + $0x60] sm:$0xff]  }
 0x23b   :  { %v4061_v42 = vld [vmem:[%s5223_s4 + $0x20] sm:$0xff]  }
 0x23c   :  { %v1152_v47 = vrot.slane %v1147_v29, %v4792_v33  ;;  %v4062_v29 = vld [vmem:[%s5223_s4 + $0xa0] sm:$0xff]  }
 0x23e   :  { %v1154_v57 = vsel %vm477_vm12, %v1145_v50, %v1152_v47  ;;  %v4059_v50 = vld [vmem:[%s5223_s4 + $0xa8] sm:$0xff]   ;;  %v4063_v47 = vld [vmem:[%s5223_s4 + $0x58] sm:$0xff]  }
 0x23f   :  { %v1157_v49 = vsel %vm1155_vm13, %v1154_v57, 0  ;;  %v4064_v57 = vld [vmem:[%s5223_s4 + $0x18] sm:$0xff]  }
 0x240   :  { %v1225_v16 = vand.u32 4294901760, %v1157_v49 }
 0x242   :  { %v1226_v53 = vsub.f32 %v1157_v49, %v1225_v16  ;;  %3741 = vmatmul.mubr.f32.vlgmr.msra.gmra.mxu1 %v1225_v16  ;;  %v4065_v49 = vld [vmem:[%s5223_s4 + $0x98] sm:$0xff]  }
 0x243   :  { %3749 = vmatpush3.msra.mxu1 %v4764_v55  ;;  %3750 = vmatprep.mubr.msk.f32.mxu1 %vm4085_vm11, %v5324_v39 }
 0x244   :  { %v1227_v38 = vand.u32 4294901760, %v1226_v53  ;;  %3758 = vmatprep.subr.mxu1 %v5324_v39 }
 0x246   :  { %3751 = vmatmul.mubr.f32.vlgmr.msra.gmra.mxu1 %v1227_v38  ;;  %v1228_v9 = vsub.f32 %v1226_v53, %v1227_v38  ;;  %v4068_v38 = vld [vmem:[%s5223_s4 + $0x90] sm:$0xff]  }
 0x247   :  { %3759 = vmatpush3.msra.mxu1 %v4764_v55  ;;  %3760 = vmatprep.mubr.msk.f32.mxu1 %vm4085_vm11, %v5324_v39 }
 0x248   :  { %v1229_v61 = vand.u32 4294901760, %v1228_v9  ;;  %3763 = vmatprep.subr.bf16.mxu1 %v4053_v56  ;;  %v4069_v9 = vld [vmem:[%s5223_s4 + $0x48] sm:$0xff]  }
 0x24a   :  { %3736 = vmatmul.mubr.f32.vlgmr.msra.gmra.mxu0 %v1229_v61  ;;  %3761 = vmatmul.mubr.f32.vlgmr.msra.gmra.mxu1 %v1225_v16  ;;  %v4070_v61 = vld [vmem:[%s5223_s4 + $0x8] sm:$0xff]  }
 0x24b   :  { %3744 = vmatpush3.msra.mxu0 %v4767_v32  ;;  %3745 = vmatprep.mubr.msk.f32.mxu0 %vm4085_vm11, %v5324_v39 }
 0x24c   :  { %3753 = vmatprep.subr.mxu0 %v5324_v39  ;;  %3764 = vmatpush3.bf16.msra.mxu1 %v4053_v56  ;;  %v4073_v56 = vld [vmem:[%s5223_s4] sm:$0xff]  }
 0x24d   :  { %3765 = vmatprep.subr.bf16.mxu1 %v4056_v34 }
 0x24e   :  { %3746 = vmatmul.mubr.f32.vlgmr.msra.gmra.mxu0 %v1226_v53  ;;  %v4067_v53 = vld [vmem:[%s5223_s4 + $0x10] sm:$0xff]  }
 0x24f   :  { %3754 = vmatpush3.msra.mxu0 %v4772_v19  ;;  %3755 = vmatprep.mubr.msk.f32.mxu0 %vm4085_vm11, %v5324_v39 }
 0x250   :  { %3351 = vmatprep.subr.bf16.mxu0 %v4051_v63  ;;  %3766 = vmatpush3.bf16.msra.mxu1 %v4056_v34  ;;  %v4071_v63 = vld [vmem:[%s5223_s4 + $0x88] sm:$0xff]  }
 0x251   :  { %3767 = vmatprep.subr.bf16.mxu1 %v4059_v50 }
 0x252   :  { %3756 = vmatmul.mubr.f32.vlgmr.msra.gmra.mxu0 %v1225_v16  ;;  %v4066_v16 = vld [vmem:[%s5223_s4 + $0x50] sm:$0xff]  }
 0x253   :  { %3352 = vmatpush3.bf16.msra.mxu0 %v4052_v23  ;;  %v4072_v23 = vld [vmem:[%s5223_s4 + $0x40] sm:$0xff]  }
 0x254   :  { %3353 = vmatprep.subr.bf16.mxu0 %v4054_v15  ;;  %3768 = vmatpush3.bf16.msra.mxu1 %v4059_v50  ;;  %v4074_v15 = vld [vmem:[%s5223_s4 + $0x80] sm:$0xff]  }
 0x255   :  { %3769 = vmatprep.subr.bf16.mxu1 %v4062_v29 }
 0x257   :  { %3354 = vmatpush3.bf16.msra.mxu0 %v4055_v13 }
 0x258   :  { %3355 = vmatprep.subr.bf16.mxu0 %v4057_v17  ;;  %3770 = vmatpush3.bf16.msra.mxu1 %v4062_v29 }
 0x259   :  { %3771 = vmatprep.subr.bf16.mxu1 %v4065_v49 }
 0x25b   :  { %3356 = vmatpush3.bf16.msra.mxu0 %v4058_v58 }
 0x25c   :  { %3357 = vmatprep.subr.bf16.mxu0 %v4060_v35  ;;  %3772 = vmatpush3.bf16.msra.mxu1 %v4065_v49 }
 0x25d   :  { %3773 = vmatprep.subr.bf16.mxu1 %v4068_v38 }
 0x25f   :  { %3358 = vmatpush3.bf16.msra.mxu0 %v4061_v42 }
 0x260   :  { %3359 = vmatprep.subr.bf16.mxu0 %v4063_v47  ;;  %3774 = vmatpush3.bf16.msra.mxu1 %v4068_v38 }
 0x261   :  { %3775 = vmatprep.subr.bf16.mxu1 %v4071_v63 }
 0x263   :  { %3360 = vmatpush3.bf16.msra.mxu0 %v4064_v57 }
 0x264   :  { %3361 = vmatprep.subr.bf16.mxu0 %v4066_v16  ;;  %3776 = vmatpush3.bf16.msra.mxu1 %v4071_v63 }
 0x265   :  { %3777 = vmatprep.subr.bf16.mxu1 %v4074_v15 }
 0x267   :  { %3362 = vmatpush3.bf16.msra.mxu0 %v4067_v53 }
 0x268   :  { %3363 = vmatprep.subr.bf16.mxu0 %v4069_v9  ;;  %3778 = vmatpush3.bf16.msra.mxu1 %v4074_v15 }
 0x269   :  { %3818 = vmatprep.subr.mxu1 %v5324_v39 }
 0x26b   :  { %3364 = vmatpush3.bf16.msra.mxu0 %v4070_v61  ;;  %v5275_v61 = vsub.s32 1, %v5335_v26 }
 0x26c   :  { %3365 = vmatprep.subr.bf16.mxu0 %v4072_v23 }
 0x26f   :  { %3366 = vmatpush3.bf16.msra.mxu0 %v4073_v56 }
 0x270   :  { %3783 = vmatprep.subr.mxu0 %v5324_v39 }
 0x302   :  { %v1307_v13 = vpop.f32.mrf.mxu1 }
 0x304   :  { %v3742_v34 = vpop.f32.mrf.mxu1 }
 0x306   :  { %v1455_v17 = vpop.f32.mrf.mxu1 }
 0x308   :  { %v3752_v58 = vpop.f32.mrf.mxu1 }
 0x30a   :  { %v1231_v50 = vpop.f32.mrf.mxu0  ;;  %v1601_v35 = vpop.f32.mrf.mxu1 }
 0x30b   :  { %v1308_v47 = vadd.f32 %v1307_v13, %v1231_v50  ;;  %v5336_v13 = vld [vmem:[#allocation37_spill] sm:$0xff] }
 0x30c   :  { %v3737_v42 = vpop.f32.mrf.mxu0  ;;  %v3762_v29 = vpop.f32.mrf.mxu1 }
 0x30d   :  { %v5337_v42 = vld [vmem:[#allocation36_spill] sm:$0xff] }
 0x30e   :  { %v1381_v57 = vpop.f32.mrf.mxu0 }
 0x30f   :  { %v1382_v49 = vadd.f32 %v1381_v57, %v1308_v47 }
 0x310   :  { %v3747_v16 = vpop.f32.mrf.mxu0 }
 0x311   :  { %v1456_v53 = vadd.f32 %v1455_v17, %v1382_v49 }
 0x312   :  { %v1529_v38 = vpop.f32.mrf.mxu0 }
 0x313   :  { %v1530_v9 = vadd.f32 %v1529_v38, %v1456_v53 }
 0x314   :  { %v3757_v63 = vpop.f32.mrf.mxu0 }
 0x315   :  { %v1602_v23 = vadd.f32 %v1601_v35, %v1530_v9 }
 0x317   :  { %v1608_v56 = vrot.slane %v1602_v23, %v4792_v33  ;;  %v1616_v15 = vrot.slane %v1602_v23, %v5275_v61 }
 0x319   :  { %v1611_v34 = vmul.f32 %v1608_v56, %v4595_v54  ;;  %v1612_v58 = vmul.f32 %v1608_v56, %v4604_v45  ;;  %v1609_v50 = vmul.f32 %v1608_v56, %v5336_v13  ;;  %v1610_v29 = vmul.f32 %v1608_v56, %v5337_v42 }
 0x31b   :  { %v1619_v17 = vadd.f32 %v1616_v15, %v1611_v34  ;;  %v1620_v47 = vadd.f32 %v1616_v15, %v1612_v58  ;;  %v1617_v57 = vadd.f32 %v1616_v15, %v1609_v50  ;;  %v1618_v49 = vadd.f32 %v1616_v15, %v1610_v29 }
 0x31d   :  { %v1623_v16 = vmax.f32 %v1619_v17, 0.0  ;;  %v1624_v53 = vmax.f32 %v1620_v47, 0.0  ;;  %v1621_v35 = vmax.f32 %v1617_v57, 0.0  ;;  %v1622_v38 = vmax.f32 %v1618_v49, 0.0 }
 0x31f   :  { %v1625_v9 = vrot.slane %v1621_v35, 7  ;;  %v1626_v63 = vrot.slane %v1622_v38, 7  ;;  %v1650_v19 = vpack.c.bf16 %v1622_v38, %v1621_v35  ;;  %v1628_v23 = vrot.slane %v1624_v53, 7 }
 0x320   :  { %v1637_v61 = vrot.slane %v1621_v35, 1  ;;  %v1638_v54 = vrot.slane %v1622_v38, 1  ;;  %v1639_v32 = vrot.slane %v1623_v16, 1  ;;  %v1640_v34 = vrot.slane %v1624_v53, 1 }
 0x321   :  { %1879 = vmatprep.mubr.bf16.mxu0 %v1650_v19  ;;  %v1631_v45 = vsel %vm119_vm2, %v1625_v9, %v1626_v63  ;;  %v1632_v56 = vsel %vm119_vm2, %v1628_v23, %v1625_v9  ;;  %v1653_v50 = vpack.c.bf16 %v1624_v53, %v1623_v16  ;;  %v1627_v17 = vrot.slane %v1623_v16, 7  ;;  %v5341_v16 = vld [vmem:[#allocation7_spill] sm:$0xff]  ;;  %v5342_v53 = vld [vmem:[#allocation8_spill] sm:$0xff]  ;;  %v5343_v9 = vld [vmem:[#allocation10_spill] sm:$0xff] }
 0x322   :  { %v3188_v15 = vpack.c.bf16 %v1631_v45, %v1632_v56  ;;  %v1642_v58 = vsel %vm140_vm0, %v1638_v54, %v1639_v32  ;;  %v1643_v13 = vsel %vm140_vm0, %v1637_v61, %v1638_v54  ;;  %v1641_v29 = vsel %vm140_vm0, %v1639_v32, %v1640_v34  ;;  %v5346_v54 = vld [vmem:[#allocation15_spill] sm:$0xff]  ;;  %v5347_v45 = vld [vmem:[#allocation16_spill] sm:$0xff]  ;;  %v5348_v56 = vld [vmem:[#allocation18_spill] sm:$0xff] }
 0x323   :  { %v3194_v42 = vpack.c.bf16 %v1642_v58, %v1643_v13  ;;  %v1644_v19 = vsel %vm140_vm0, %v1640_v34, %v1637_v61  ;;  %v1629_v32 = vsel %vm119_vm2, %v1627_v17, %v1628_v23  ;;  %v1630_v61 = vsel %vm119_vm2, %v1626_v63, %v1627_v17  ;;  %v5345_v23 = vld [vmem:[#allocation13_spill] sm:$0xff]  ;;  %v5349_v34 = vld [vmem:[#allocation20_spill] sm:$0xff]  ;;  %v5352_v13 = vld [vmem:[#allocation26_spill] sm:$0xff] }
 0x324   :  { %3189 = vmatmul.mubr.msk.bf16.vlgmr.msra.gmra.mxu0 %vm4255_vm7, %v3188_v15  ;;  %v3197_v57 = vpack.c.bf16 %v1644_v19, %v1641_v29  ;;  %v3191_v38 = vpack.c.bf16 %v1629_v32, %v1630_v61  ;;  %v5350_v15 = vld [vmem:[#allocation22_spill] sm:$0xff]  ;;  %v5351_v58 = vld [vmem:[#allocation25_spill] sm:$0xff]  ;;  %v5355_v29 = vld [vmem:[#allocation32_spill] sm:$0xff] }
 0x325   :  { %3779 = vmatprep.mubr.msk.bf16.mxu1 %vm4241_vm4, %v3194_v42  ;;  %1887 = vmatprep.mubr.bf16.mxu0 %v1653_v50  ;;  %v5353_v50 = vld [vmem:[#allocation28_spill] sm:$0xff]  ;;  %v5354_v42 = vld [vmem:[#allocation30_spill] sm:$0xff]  ;;  %v5357_v17 = vld [vmem:[#allocation35_spill] sm:$0xff] }
 0x326   :  { %3780 = vmatmul.mubr.msk.bf16.vlgmr.msra.gmra.mxu1 %vm4260_vm8, %v3197_v57  ;;  %3784 = vmatpush3.msra.mxu0 %v4282_v1  ;;  %v5356_v19 = vld [vmem:[#allocation34_spill] sm:$0xff] }
 0x327   :  { %3819 = vmatpush3.msra.mxu1 %v5341_v16  ;;  %3785 = vmatprep.subr.mxu0 %v5324_v39 }
 0x328   :  { %3820 = vmatprep.subr.mxu1 %v5324_v39  ;;  %3786 = vmatpush3.msra.mxu0 %v4290_v4 }
 0x329   :  { %3821 = vmatpush3.msra.mxu1 %v5342_v53  ;;  %3787 = vmatprep.subr.mxu0 %v5324_v39 }
 0x32a   :  { %3822 = vmatprep.subr.mxu1 %v5324_v39  ;;  %3788 = vmatpush3.msra.mxu0 %v4301_v8 }
 0x32b   :  { %3823 = vmatpush3.msra.mxu1 %v5343_v9  ;;  %3789 = vmatprep.subr.mxu0 %v5324_v39 }
 0x32c   :  { %3192 = vmatmul.mubr.msk.bf16.gmra.mxu0 %vm4273_vm10, %v3191_v38  ;;  %3824 = vmatprep.subr.mxu1 %v5324_v39 }
 0x32d   :  { %3825 = vmatpush3.msra.mxu1 %v5345_v23  ;;  %3790 = vmatpush3.msra.mxu0 %v4314_v14 }
 0x32e   :  { %3826 = vmatprep.subr.mxu1 %v5324_v39  ;;  %3791 = vmatprep.subr.mxu0 %v5324_v39 }
 0x32f   :  { %3827 = vmatpush3.msra.mxu1 %v5346_v54  ;;  %3792 = vmatpush3.msra.mxu0 %v4331_v21 }
 0x330   :  { %3828 = vmatprep.subr.mxu1 %v5324_v39  ;;  %3793 = vmatprep.subr.mxu0 %v5324_v39 }
 0x331   :  { %3829 = vmatpush3.msra.mxu1 %v5347_v45  ;;  %3794 = vmatpush3.msra.mxu0 %v4342_v25 }
 0x332   :  { %3830 = vmatprep.subr.mxu1 %v5324_v39  ;;  %3795 = vmatprep.subr.mxu0 %v5324_v39 }
 0x333   :  { %3831 = vmatpush3.msra.mxu1 %v5348_v56  ;;  %3796 = vmatpush3.msra.mxu0 %v4362_v31 }
 0x334   :  { %3832 = vmatprep.subr.mxu1 %v5324_v39  ;;  %3797 = vmatprep.subr.mxu0 %v5324_v39 }
 0x335   :  { %3833 = vmatpush3.msra.mxu1 %v5349_v34  ;;  %3798 = vmatpush3.msra.mxu0 %v4382_v37 }
 0x336   :  { %3834 = vmatprep.subr.mxu1 %v5324_v39  ;;  %3799 = vmatprep.subr.mxu0 %v5324_v39 }
 0x337   :  { %3835 = vmatpush3.msra.mxu1 %v5350_v15  ;;  %3800 = vmatpush3.msra.mxu0 %v4402_v44 }
 0x338   :  { %3836 = vmatprep.subr.mxu1 %v5324_v39  ;;  %3801 = vmatprep.subr.mxu0 %v5324_v39 }
 0x339   :  { %3837 = vmatpush3.msra.mxu1 %v5351_v58  ;;  %3802 = vmatpush3.msra.mxu0 %v4425_v52 }
 0x33a   :  { %3838 = vmatprep.subr.mxu1 %v5324_v39  ;;  %3803 = vmatprep.subr.mxu0 %v5324_v39 }
 0x33b   :  { %3839 = vmatpush3.msra.mxu1 %v5352_v13  ;;  %3804 = vmatpush3.msra.mxu0 %v4439_v59 }
 0x33c   :  { %3840 = vmatprep.subr.mxu1 %v5324_v39  ;;  %3805 = vmatprep.subr.mxu0 %v5324_v39 }
 0x33d   :  { %3841 = vmatpush3.msra.mxu1 %v5353_v50  ;;  %3806 = vmatpush3.msra.mxu0 %v4458_v5 }
 0x33e   :  { %3842 = vmatprep.subr.mxu1 %v5324_v39  ;;  %3807 = vmatprep.subr.mxu0 %v5324_v39 }
 0x33f   :  { %3843 = vmatpush3.msra.mxu1 %v5354_v42  ;;  %3850 = vmatprep.mubr.msk.f32.mxu1 %vm4085_vm11, %v5324_v39 }
 0x340   :  { %3844 = vmatprep.subr.mxu1 %v5324_v39  ;;  %3808 = vmatpush3.msra.mxu0 %v4478_v24 }
 0x341   :  { %3845 = vmatpush3.msra.mxu1 %v5355_v29  ;;  %3809 = vmatprep.subr.mxu0 %v5324_v39 }
 0x342   :  { %3846 = vmatprep.subr.mxu1 %v5324_v39  ;;  %3810 = vmatpush3.msra.mxu0 %v4497_v41 }
 0x343   :  { %3847 = vmatpush3.msra.mxu1 %v5356_v19  ;;  %3811 = vmatprep.subr.mxu0 %v5324_v39 }
 0x344   :  { %3848 = vmatprep.subr.mxu1 %v5324_v39  ;;  %3812 = vmatpush3.msra.mxu0 %v4520_v10 }
 0x345   :  { %3849 = vmatpush3.msra.mxu1 %v5357_v17  ;;  %3813 = vmatprep.subr.mxu0 %v5324_v39 }
 0x346   :  { %3888 = vmatprep.subr.mxu1 %v5324_v39  ;;  %3814 = vmatpush3.msra.mxu0 %v4534_v46 }
 0x347   :  { %3815 = vmatprep.mubr.msk.f32.mxu0 %vm4085_vm11, %v5324_v39  ;;  %3853 = vmatprep.subr.mxu0 %v5324_v39 }
 0x3e4   :  { %v3367_v47 = vpop.f32.mrf.mxu0 }
 0x3e6   :  { %v3781_v57 = vpop.f32.mrf.mxu1  ;;  %v3368_v49 = vpop.f32.mrf.mxu0 }
 0x3e7   :  { %v3369_v53 = vadd.f32 %v3368_v49, %v3367_v47 }
 0x3e8   :  { %v1930_v35 = vpop.f32.mrf.mxu1  ;;  %v3370_v32 = vpop.f32.mrf.mxu0 }
 0x3e9   :  { %v4987_v45 = vadd.f32 %v3369_v53, %v1930_v35 }
 0x3ea   :  { %v3782_v61 = vpop.f32.mrf.mxu1  ;;  %v3371_v16 = vpop.f32.mrf.mxu0 }
 0x3eb   :  { %v3372_v38 = vadd.f32 %v3371_v16, %v3370_v32  ;;  %v1956_v50 = vmul.f32 %v4987_v45, %v4987_v45 }
 0x3ec   :  { %v1933_v9 = vpop.f32.mrf.mxu1  ;;  %v3373_v63 = vpop.f32.mrf.mxu0 }
 0x3ed   :  { %v4985_v23 = vadd.f32 %v3372_v38, %v1933_v9 }
 0x3ee   :  { %v3374_v54 = vpop.f32.mrf.mxu0 }
 0x3ef   :  { %5358 = vst [vmem:[#allocation2_spill] sm:$0xff] %v4985_v23  ;;  %v3375_v56 = vadd.f32 %v3374_v54, %v3373_v63  ;;  %v1957_v15 = vmul.f32 %v4985_v23, %v4985_v23  ;;  %v1947_v42 = vadd.f32 %v4985_v23, %v4987_v45 }
 0x3f0   :  { %v3376_v34 = vpop.f32.mrf.mxu0 }
 0x3f1   :  { %v4991_v58 = vadd.f32 %v3781_v57, %v3375_v56  ;;  %v1960_v17 = vadd.f32 %v1957_v15, %v1956_v50 }
 0x3f2   :  { %v3377_v13 = vpop.f32.mrf.mxu0 }
 0x3f3   :  { %v1958_v29 = vmul.f32 %v4991_v58, %v4991_v58  ;;  %v3378_v19 = vadd.f32 %v3377_v13, %v3376_v34  ;;  %v1948_v47 = vadd.f32 %v1947_v42, %v4991_v58 }
 0x3f5   :  { %v5000_v49 = vadd.f32 %v3782_v61, %v3378_v19  ;;  %v1961_v35 = vadd.f32 %v1960_v17, %v1958_v29 }
 0x3f7   :  { %v1949_v57 = vadd.f32 %v1948_v47, %v5000_v49  ;;  %v1959_v32 = vmul.f32 %v5000_v49, %v5000_v49 }
 0x3f9   :  { %v1950_v16 = vrot.slane %v1949_v57, 4  ;;  %v1962_v53 = vadd.f32 %v1961_v35, %v1959_v32 }
 0x3fb   :  { %v1951_v38 = vadd.f32 %v1950_v16, %v1949_v57  ;;  %v1963_v9 = vrot.slane %v1962_v53, 4 }
 0x3fd   :  { %v1952_v63 = vrot.slane %v1951_v38, 2  ;;  %v1964_v54 = vadd.f32 %v1963_v9, %v1962_v53  ;;  %v1945_v53 = vld [vmem:[%s5224_s5] sm:$0x1] }
 0x3ff   :  { %v1953_v56 = vadd.f32 %v1952_v63, %v1951_v38  ;;  %v1965_v23 = vrot.slane %v1964_v54, 2  ;;  %v1946_v63 = vld [vmem:[%s5225_s6] sm:$0x1] }
 0x401   :  { %v1954_v34 = vrot.slane %v1953_v56, 1  ;;  %v1966_v15 = vadd.f32 %v1965_v23, %v1964_v54 }
 0x403   :  { %v1967_v13 = vrot.slane %v1966_v15, 1  ;;  %v1955_v50 = vadd.f32 %v1954_v34, %v1953_v56 }
 0x405   :  { %v1968_v61 = vadd.f32 %v1967_v13, %v1966_v15 }
 0x407   :  { %v1969_v42 = vsel %vm477_vm12, %v1955_v50, %v1968_v61 }
 0x408   :  { %v5006_v29 = vand.u32 4294901760, %v1969_v42 }
 0x40a   :  { %v5009_v19 = vsub.f32 %v1969_v42, %v5006_v29  ;;  %3851 = vmatmul.mubr.f32.vlgmr.msra.gmra.mxu1 %v5006_v29 }
 0x40b   :  { %3889 = vmatpush3.msra.mxu1 %v4282_v1  ;;  %3920 = vmatprep.mubr.msk.f32.mxu1 %vm4085_vm11, %v5324_v39 }
 0x40c   :  { %v2053_v17 = vand.u32 4294901760, %v5009_v19  ;;  %3890 = vmatprep.subr.mxu1 %v5324_v39 }
 0x40d   :  { %3891 = vmatpush3.msra.mxu1 %v4290_v4 }
 0x40e   :  { %3892 = vmatprep.subr.mxu1 %v5324_v39  ;;  %v2054_v23 = vsub.f32 %v5009_v19, %v2053_v17 }
 0x40f   :  { %3893 = vmatpush3.msra.mxu1 %v4301_v8 }
 0x410   :  { %3894 = vmatprep.subr.mxu1 %v5324_v39  ;;  %v2055_v47 = vand.u32 4294901760, %v2054_v23 }
 0x411   :  { %3895 = vmatpush3.msra.mxu1 %v4314_v14 }
 0x412   :  { %3896 = vmatprep.subr.mxu1 %v5324_v39  ;;  %3816 = vmatmul.mubr.f32.vlgmr.msra.gmra.mxu0 %v2055_v47 }
 0x413   :  { %3854 = vmatpush3.msra.mxu0 %v4288_v3  ;;  %3897 = vmatpush3.msra.mxu1 %v4331_v21  ;;  %v5360_v3 = vld [vmem:[#allocation11_spill] sm:$0xff] }
 0x414   :  { %3855 = vmatprep.subr.mxu0 %v5324_v39  ;;  %3898 = vmatprep.subr.mxu1 %v5324_v39 }
 0x415   :  { %3856 = vmatpush3.msra.mxu0 %v4299_v7  ;;  %3899 = vmatpush3.msra.mxu1 %v4342_v25  ;;  %v5363_v7 = vld [vmem:[#allocation17_spill] sm:$0xff] }
 0x416   :  { %3857 = vmatprep.subr.mxu0 %v5324_v39  ;;  %3900 = vmatprep.subr.mxu1 %v5324_v39 }
 0x417   :  { %3858 = vmatpush3.msra.mxu0 %v4312_v12  ;;  %3901 = vmatpush3.msra.mxu1 %v4362_v31  ;;  %v5366_v12 = vld [vmem:[#allocation23_spill] sm:$0xff] }
 0x418   :  { %3859 = vmatprep.subr.mxu0 %v5324_v39  ;;  %3902 = vmatprep.subr.mxu1 %v5324_v39 }
 0x419   :  { %3860 = vmatpush3.msra.mxu0 %v4328_v20  ;;  %3903 = vmatpush3.msra.mxu1 %v4382_v37  ;;  %v5369_v20 = vld [vmem:[#allocation29_spill] sm:$0xff] }
 0x41a   :  { %3861 = vmatprep.subr.mxu0 %v5324_v39  ;;  %3904 = vmatprep.subr.mxu1 %v5324_v39 }
 0x41b   :  { %3862 = vmatpush3.msra.mxu0 %v4349_v27  ;;  %3905 = vmatpush3.msra.mxu1 %v4402_v44  ;;  %v5372_v27 = vld [vmem:[#allocation33_spill] sm:$0xff] }
 0x41c   :  { %3863 = vmatprep.subr.mxu0 %v5324_v39  ;;  %3906 = vmatprep.subr.mxu1 %v5324_v39 }
 0x41d   :  { %3864 = vmatpush3.msra.mxu0 %v4360_v30  ;;  %3907 = vmatpush3.msra.mxu1 %v4425_v52 }
 0x41e   :  { %3865 = vmatprep.subr.mxu0 %v5324_v39  ;;  %3908 = vmatprep.subr.mxu1 %v5324_v39 }
 0x41f   :  { %3866 = vmatpush3.msra.mxu0 %v4380_v36  ;;  %3909 = vmatpush3.msra.mxu1 %v4439_v59 }
 0x420   :  { %3867 = vmatprep.subr.mxu0 %v5324_v39  ;;  %3910 = vmatprep.subr.mxu1 %v5324_v39 }
 0x421   :  { %3868 = vmatpush3.msra.mxu0 %v4400_v43  ;;  %3911 = vmatpush3.msra.mxu1 %v4458_v5 }
 0x422   :  { %3869 = vmatprep.subr.mxu0 %v5324_v39  ;;  %3912 = vmatprep.subr.mxu1 %v5324_v39 }
 0x423   :  { %3870 = vmatpush3.msra.mxu0 %v4421_v51  ;;  %3913 = vmatpush3.msra.mxu1 %v4478_v24 }
 0x424   :  { %3871 = vmatprep.subr.mxu0 %v5324_v39  ;;  %3914 = vmatprep.subr.mxu1 %v5324_v39 }
 0x425   :  { %3872 = vmatpush3.msra.mxu0 %v4443_v60  ;;  %3915 = vmatpush3.msra.mxu1 %v4497_v41 }
 0x426   :  { %3873 = vmatprep.subr.mxu0 %v5324_v39  ;;  %3916 = vmatprep.subr.mxu1 %v5324_v39 }
 0x427   :  { %3874 = vmatpush3.msra.mxu0 %v4456_v2  ;;  %3917 = vmatpush3.msra.mxu1 %v4520_v10 }
 0x428   :  { %3875 = vmatprep.subr.mxu0 %v5324_v39  ;;  %3918 = vmatprep.subr.mxu1 %v5324_v39 }
 0x429   :  { %3876 = vmatpush3.msra.mxu0 %v4476_v22  ;;  %3919 = vmatpush3.msra.mxu1 %v4534_v46 }
 0x42a   :  { %3877 = vmatprep.subr.mxu0 %v5324_v39  ;;  %3921 = vmatmul.mubr.f32.vlgmr.msra.gmra.mxu1 %v2053_v17  ;;  %v5374_v17 = vld [vmem:[#allocation39_spill] sm:$0xff] }
 0x42b   :  { %3958 = vmatprep.subr.mxu1 %v5324_v39  ;;  %3878 = vmatpush3.msra.mxu0 %v4495_v40 }
 0x42c   :  { %3959 = vmatpush3.msra.mxu1 %v4282_v1  ;;  %3879 = vmatprep.subr.mxu0 %v5324_v39  ;;  %v5359_v1 = vld [vmem:[#allocation9_spill] sm:$0xff] }
 0x42d   :  { %3960 = vmatprep.subr.mxu1 %v5324_v39  ;;  %3880 = vmatpush3.msra.mxu0 %v4516_v0 }
 0x42e   :  { %3961 = vmatpush3.msra.mxu1 %v4290_v4  ;;  %3881 = vmatprep.subr.mxu0 %v5324_v39  ;;  %v5361_v4 = vld [vmem:[#allocation12_spill] sm:$0xff] }
 0x42f   :  { %3962 = vmatprep.subr.mxu1 %v5324_v39  ;;  %3882 = vmatpush3.msra.mxu0 %v4538_v62 }
 0x430   :  { %3963 = vmatpush3.msra.mxu1 %v4301_v8  ;;  %3883 = vmatprep.subr.mxu0 %v5324_v39  ;;  %v5364_v8 = vld [vmem:[#allocation19_spill] sm:$0xff] }
 0x431   :  { %3964 = vmatprep.subr.mxu1 %v5324_v39  ;;  %3884 = vmatpush3.msra.mxu0 %v4548_v48 }
 0x432   :  { %3885 = vmatprep.mubr.msk.f32.mxu0 %vm4085_vm11, %v5324_v39  ;;  %3965 = vmatpush3.msra.mxu1 %v4314_v14  ;;  %v5367_v14 = vld [vmem:[#allocation24_spill] sm:$0xff] }
 0x433   :  { %3886 = vmatmul.mubr.f32.vlgmr.msra.gmra.mxu0 %v5009_v19  ;;  %3923 = vmatprep.subr.mxu0 %v5324_v39  ;;  %v5373_v19 = vld [vmem:[#allocation38_spill] sm:$0xff] }
 0x434   :  { %3966 = vmatprep.subr.mxu1 %v5324_v39  ;;  %3924 = vmatpush3.msra.mxu0 %v4296_v6  ;;  %v5362_v6 = vld [vmem:[#allocation14_spill] sm:$0xff] }
 0x435   :  { %3967 = vmatpush3.msra.mxu1 %v4331_v21  ;;  %3925 = vmatprep.subr.mxu0 %v5324_v39  ;;  %v5370_v21 = vld [vmem:[#allocation40_spill] sm:$0xff] }
 0x436   :  { %3968 = vmatprep.subr.mxu1 %v5324_v39  ;;  %3926 = vmatpush3.msra.mxu0 %v4309_v11  ;;  %v5365_v11 = vld [vmem:[#allocation21_spill] sm:$0xff] }
 0x437   :  { %3969 = vmatpush3.msra.mxu1 %v4342_v25  ;;  %3927 = vmatprep.subr.mxu0 %v5324_v39  ;;  %v5371_v25 = vld [vmem:[#allocation31_spill] sm:$0xff] }
 0x438   :  { %3970 = vmatprep.subr.mxu1 %v5324_v39  ;;  %3928 = vmatpush3.msra.mxu0 %v4324_v18  ;;  %v5368_v18 = vld [vmem:[#allocation27_spill] sm:$0xff] }
 0x439   :  { %3971 = vmatpush3.msra.mxu1 %v4362_v31  ;;  %3929 = vmatprep.subr.mxu0 %v5324_v39 }
 0x43a   :  { %3972 = vmatprep.subr.mxu1 %v5324_v39  ;;  %3930 = vmatpush3.msra.mxu0 %v5359_v1 }
 0x43b   :  { %3973 = vmatpush3.msra.mxu1 %v4382_v37  ;;  %3931 = vmatprep.subr.mxu0 %v5324_v39 }
 0x43c   :  { %3974 = vmatprep.subr.mxu1 %v5324_v39  ;;  %3932 = vmatpush3.msra.mxu0 %v5360_v3 }
 0x43d   :  { %3975 = vmatpush3.msra.mxu1 %v4402_v44  ;;  %3933 = vmatprep.subr.mxu0 %v5324_v39 }
 0x43e   :  { %3976 = vmatprep.subr.mxu1 %v5324_v39  ;;  %3934 = vmatpush3.msra.mxu0 %v5361_v4 }
 0x43f   :  { %3977 = vmatpush3.msra.mxu1 %v4425_v52  ;;  %3935 = vmatprep.subr.mxu0 %v5324_v39 }
 0x440   :  { %3978 = vmatprep.subr.mxu1 %v5324_v39  ;;  %3936 = vmatpush3.msra.mxu0 %v5362_v6 }
 0x441   :  { %3979 = vmatpush3.msra.mxu1 %v4439_v59  ;;  %3937 = vmatprep.subr.mxu0 %v5324_v39 }
 0x442   :  { %3980 = vmatprep.subr.mxu1 %v5324_v39  ;;  %3938 = vmatpush3.msra.mxu0 %v5363_v7 }
 0x443   :  { %3981 = vmatpush3.msra.mxu1 %v4458_v5  ;;  %3939 = vmatprep.subr.mxu0 %v5324_v39 }
 0x444   :  { %3982 = vmatprep.subr.mxu1 %v5324_v39  ;;  %3940 = vmatpush3.msra.mxu0 %v5364_v8 }
 0x445   :  { %3983 = vmatpush3.msra.mxu1 %v4478_v24  ;;  %3941 = vmatprep.subr.mxu0 %v5324_v39 }
 0x446   :  { %3984 = vmatprep.subr.mxu1 %v5324_v39  ;;  %3942 = vmatpush3.msra.mxu0 %v5365_v11 }
 0x447   :  { %3985 = vmatpush3.msra.mxu1 %v4497_v41  ;;  %3943 = vmatprep.subr.mxu0 %v5324_v39 }
 0x448   :  { %3986 = vmatprep.subr.mxu1 %v5324_v39  ;;  %3944 = vmatpush3.msra.mxu0 %v5366_v12 }
 0x449   :  { %3987 = vmatpush3.msra.mxu1 %v4520_v10  ;;  %3945 = vmatprep.subr.mxu0 %v5324_v39 }
 0x44a   :  { %3988 = vmatprep.subr.mxu1 %v5324_v39  ;;  %3946 = vmatpush3.msra.mxu0 %v5367_v14 }
 0x44b   :  { %3989 = vmatpush3.msra.mxu1 %v4534_v46  ;;  %3990 = vmatprep.mubr.msk.f32.mxu1 %vm4085_vm11, %v5324_v39 }
 0x44c   :  { %3947 = vmatprep.subr.mxu0 %v5324_v39  ;;  %3991 = vmatmul.mubr.f32.vlgmr.msra.gmra.mxu1 %v5006_v29 }
 0x44d   :  { %3948 = vmatpush3.msra.mxu0 %v5368_v18  ;;  %3955 = vmatprep.mubr.msk.f32.mxu0 %vm4085_vm11, %v5324_v39 }
 0x44e   :  { %3949 = vmatprep.subr.mxu0 %v5324_v39  ;;  %3998 = vmatprep.subr.mxu1 %v5324_v39 }
 0x44f   :  { %3950 = vmatpush3.msra.mxu0 %v5369_v20  ;;  %3999 = vmatpush3.msra.mxu1 %v5370_v21 }
 0x450   :  { %3951 = vmatprep.subr.mxu0 %v5324_v39  ;;  %4000 = vmatprep.mubr.msk.f32.mxu1 %vm4085_vm11, %v5324_v39 }
 0x451   :  { %3952 = vmatpush3.msra.mxu0 %v5371_v25  ;;  %4008 = vmatprep.subr.mxu1 %v5324_v39 }
 0x452   :  { %3953 = vmatprep.subr.mxu0 %v5324_v39 }
 0x453   :  { %3954 = vmatpush3.msra.mxu0 %v5372_v27 }
 0x454   :  { %3956 = vmatmul.mubr.f32.vlgmr.msra.gmra.mxu0 %v5006_v29  ;;  %3993 = vmatprep.subr.mxu0 %v5324_v39 }
 0x455   :  { %3994 = vmatpush3.msra.mxu0 %v4764_v55  ;;  %3995 = vmatprep.mubr.msk.f32.mxu0 %vm4085_vm11, %v5324_v39 }
 0x456   :  { %4003 = vmatprep.subr.mxu0 %v5324_v39 }
 0x4ca   :  { %v2208_v30 = vpop.f32.mrf.mxu1 }
 0x4cc   :  { %v3852_v31 = vpop.f32.mrf.mxu1 }
 0x4d2   :  { %v2057_v36 = vpop.f32.mrf.mxu0 }
 0x4d3   :  { %v2209_v59 = vadd.f32 %v2208_v30, %v2057_v36  ;;  %v5375_v30 = vsub.s32 1, %v5335_v26  ;;  %v4080_v26 = vld [vmem:[%s5218_s0 + $0x8] sm:$0xff] }
 0x4d4   :  { %v3817_v37 = vpop.f32.mrf.mxu0 }
 0x4d5   :  { %v5376_v37 = vld [vmem:[#allocation2_spill] sm:$0xff] }
 0x4ea   :  { %v2401_v43 = vpop.f32.mrf.mxu1 }
 0x4ec   :  { %v3922_v44 = vpop.f32.mrf.mxu1 }
 0x4f3   :  { %v2312_v48 = vpop.f32.mrf.mxu0 }
 0x4f4   :  { %v2313_v62 = vadd.f32 %v2312_v48, %v2209_v59 }
 0x4f5   :  { %v3887_v51 = vpop.f32.mrf.mxu0 }
 0x4f6   :  { %v2402_v2 = vadd.f32 %v2401_v43, %v2313_v62  ;;  %v4079_v62 = vld [vmem:[%s5218_s0] sm:$0xff] }
 0x50c   :  { %v2607_v52 = vpop.f32.mrf.mxu1 }
 0x50e   :  { %v3992_v60 = vpop.f32.mrf.mxu1 }
 0x514   :  { %v2520_v5 = vpop.f32.mrf.mxu0 }
 0x515   :  { %v2521_v22 = vadd.f32 %v2520_v5, %v2402_v2 }
 0x516   :  { %v3957_v24 = vpop.f32.mrf.mxu0 }
 0x517   :  { %v2608_v40 = vadd.f32 %v2607_v52, %v2521_v22 }
 0x519   :  { %v2611_v41 = vmul.f32 0.001953125, %v2608_v40 }
 0x51b   :  { %v2612_v46 = vmul.f32 %v2611_v41, %v2611_v41 }
 0x51d   :  { %v2614_v0 = vrot.slane %v2612_v46, 7 }
 0x51f   :  { %v2616_v10 = vsub.f32 %v2611_v41, %v2614_v0 }
 0x521   :  { %v2617_v35 = vadd.f32 1e-05, %v2616_v10 }
 0x523   :  { %4077 = vrsqrt.f32 %v2617_v35 }
 0x530   :  { %v4078_v57 = vpop.eup %4077 }
 0x531   :  { %v2626_v32 = vrot.slane %v4078_v57, %v4781_v28 }
 0x533   :  { %v2627_v16 = vcombine.high %v2626_v32, %v2626_v32 }
 0x535   :  { %v2634_v38 = vrot.slane %v2627_v16, %v4781_v28 }
 0x537   :  { %v2636_v9 = vmul.f32 %v2634_v38, %v1945_v53 }
 0x539   :  { %v2637_v54 = vmul.f32 %v2636_v9, %v2611_v41 }
 0x53b   :  { %v2638_v56 = vsub.f32 %v1946_v63, %v2637_v54 }
 0x53d   :  { %v2643_v34 = vrot.slane %v2638_v56, %v4792_v33 }
 0x53f   :  { %v2645_v15 = vsel %vm477_vm12, %v2636_v9, %v2643_v34 }
 0x540   :  { %v2647_v13 = vsel %vm1155_vm13, %v2645_v15, 0 }
 0x541   :  { %v2715_v50 = vand.u32 4294901760, %v2647_v13 }
 0x543   :  { %v2716_v61 = vsub.f32 %v2647_v13, %v2715_v50  ;;  %4001 = vmatmul.mubr.f32.vlgmr.msra.gmra.mxu1 %v2715_v50 }
 0x544   :  { %4009 = vmatpush3.msra.mxu1 %v4764_v55  ;;  %4010 = vmatprep.mubr.msk.f32.mxu1 %vm4085_vm11, %v5324_v39 }
 0x545   :  { %v2717_v28 = vand.u32 4294901760, %v2716_v61  ;;  %4018 = vmatprep.subr.mxu1 %v5324_v39 }
 0x547   :  { %4011 = vmatmul.mubr.f32.vlgmr.msra.gmra.mxu1 %v2717_v28  ;;  %v2718_v42 = vsub.f32 %v2716_v61, %v2717_v28 }
 0x548   :  { %4019 = vmatpush3.msra.mxu1 %v4764_v55  ;;  %4020 = vmatprep.mubr.msk.f32.mxu1 %vm4085_vm11, %v5324_v39 }
 0x549   :  { %v2719_v29 = vand.u32 4294901760, %v2718_v42 }
 0x54b   :  { %3996 = vmatmul.mubr.f32.vlgmr.msra.gmra.mxu0 %v2719_v29  ;;  %4021 = vmatmul.mubr.f32.vlgmr.msra.gmra.mxu1 %v2715_v50 }
 0x54c   :  { %4004 = vmatpush3.msra.mxu0 %v5373_v19  ;;  %4005 = vmatprep.mubr.msk.f32.mxu0 %vm4085_vm11, %v5324_v39 }
 0x54d   :  { %4013 = vmatprep.subr.mxu0 %v5324_v39 }
 0x54f   :  { %4006 = vmatmul.mubr.f32.vlgmr.msra.gmra.mxu0 %v2716_v61 }
 0x550   :  { %4014 = vmatpush3.msra.mxu0 %v5374_v17  ;;  %4015 = vmatprep.mubr.msk.f32.mxu0 %vm4085_vm11, %v5324_v39 }
 0x553   :  { %4016 = vmatmul.mubr.f32.vlgmr.msra.gmra.mxu0 %v2715_v50 }
 0x603   :  { %v2797_v55 = vpop.f32.mrf.mxu1 }
 0x605   :  { %v4002_v23 = vpop.f32.mrf.mxu1 }
 0x607   :  { %v2945_v47 = vpop.f32.mrf.mxu1 }
 0x609   :  { %v4012_v1 = vpop.f32.mrf.mxu1 }
 0x60b   :  { %v2721_v3 = vpop.f32.mrf.mxu0  ;;  %v3091_v4 = vpop.f32.mrf.mxu1 }
 0x60c   :  { %v2798_v8 = vadd.f32 %v2797_v55, %v2721_v3 }
 0x60d   :  { %v3997_v6 = vpop.f32.mrf.mxu0  ;;  %v4022_v7 = vpop.f32.mrf.mxu1 }
 0x60f   :  { %v2871_v11 = vpop.f32.mrf.mxu0 }
 0x610   :  { %v2872_v12 = vadd.f32 %v2871_v11, %v2798_v8 }
 0x611   :  { %v4007_v14 = vpop.f32.mrf.mxu0 }
 0x612   :  { %v2946_v18 = vadd.f32 %v2945_v47, %v2872_v12 }
 0x613   :  { %v3019_v20 = vpop.f32.mrf.mxu0 }
 0x614   :  { %v3020_v21 = vadd.f32 %v3019_v20, %v2946_v18 }
 0x615   :  { %v4017_v25 = vpop.f32.mrf.mxu0 }
 0x616   :  { %v3092_v27 = vadd.f32 %v3091_v4, %v3020_v21 }
 0x618   :  { %v3098_v39 = vrot.slane %v3092_v27, %v4792_v33  ;;  %v3106_v31 = vrot.slane %v3092_v27, %v5375_v30 }
 0x61a   :  { %v3099_v36 = vmul.f32 %v3098_v39, %v4987_v45  ;;  %v3100_v43 = vmul.f32 %v3098_v39, %v5376_v37  ;;  %v3101_v44 = vmul.f32 %v3098_v39, %v4991_v58  ;;  %v3102_v48 = vmul.f32 %v3098_v39, %v5000_v49  ;;  %v4081_v58 = vld [vmem:[%s5218_s0 + $0x10] sm:$0xff]  ;;  %v4082_v49 = vld [vmem:[%s5218_s0 + $0x18] sm:$0xff] }
 0x61c   :  { %v3107_v51 = vadd.f32 %v3106_v31, %v3099_v36  ;;  %v3108_v52 = vadd.f32 %v3106_v31, %v3100_v43  ;;  %v3109_v59 = vadd.f32 %v3106_v31, %v3101_v44  ;;  %v3110_v60 = vadd.f32 %v3106_v31, %v3102_v48 }
 0x61e   :  { %v3111_v33 = vadd.f32 %v4079_v62, %v3107_v51  ;;  %v3112_v45 = vadd.f32 %v4080_v26, %v3108_v52  ;;  %v3113_v2 = vadd.f32 %v4081_v58, %v3109_v59  ;;  %v3114_v5 = vadd.f32 %v4082_v49, %v3110_v60 }
 0x620   :  { %v3115_v22 = vmax.f32 %v3111_v33, 0.0  ;;  %v3116_v24 = vmax.f32 %v3112_v45, 0.0  ;;  %v3117_v40 = vmax.f32 %v3113_v2, 0.0  ;;  %v3118_v41 = vmax.f32 %v3114_v5, 0.0 }
 0x622   :  { %3119 = vst [vmem:[%s5226_s9] sm:$0xff] %v3115_v22  ;;  %3120 = vst [vmem:[%s5226_s9 + $0x8] sm:$0xff] %v3116_v24 }
 0x623   :  { %3121 = vst [vmem:[%s5226_s9 + $0x10] sm:$0xff] %v3117_v40  ;;  %3122 = vst [vmem:[%s5226_s9 + $0x18] sm:$0xff] %v3118_v41 }

</bundles_post_ra>
